<compile_context>
chip_gen: v5e
topology: v5e:2x2
jax: 0.10.0
libtpu: 0.0.40
codegen_flags: <defaults>
</compile_context>

<pallas_src>
import numpy as np
import jax
import jax.numpy as jnp
from jax.experimental import pallas as pl
from jax.experimental.pallas import tpu as pltpu

NUM_CLASSES = 7
EPS = 1e-5

K = 5                       # conv kernel size, padding = 2, stride = 1
H1, W1 = 20, 12             # input spatial size (so 32*5*3 = 480 matches fc)
C1 = 16                     # layer1 channels
H2, W2 = H1 // 2, W1 // 2   # 10, 6
C2 = 32                     # layer2 channels
H3, W3 = H2 // 2, W2 // 2   # 5, 3
WPAD2 = W2 + 4              # padded width of the layer2 input (10)


# ------------------------------ fused kernel ------------------------------- #

def _convnet_kernel(a1_ref, t1_ref, sh1_ref, t2_ref, sh2_ref, u_ref, fcb_ref,
                    out_ref, pad1e_ref, pad1o_ref):
    f32 = jnp.float32

    # ---- layer 1: conv (BN scale already folded in) as 5 shift-matmuls ------
    # a1_ref[0, kh] : (20, 16)  rows r = dy*10 + par*5 + hh  <->  conv row
    #                 h1 = 4*hh + 2*par + dy, lanes = padded width wp
    # t1_ref[kh]    : (16, 192) Toeplitz weights, lanes = w1*16 + c
    c1 = jnp.dot(a1_ref[0, 0], t1_ref[0], preferred_element_type=f32)
    for kh in range(1, K):
        c1 = c1 + jnp.dot(a1_ref[0, kh], t1_ref[kh], preferred_element_type=f32)

    # 2x2 max-pool, H direction first (contiguous row blocks thanks to the
    # (dy, par, hh) row order), then BN shift + ReLU once, then W direction.
    m1 = jnp.maximum(c1[0:10, :], c1[10:20, :])            # (10, 192), rows par*5+hh
    act1 = jnp.maximum(m1 + sh1_ref[...], 0.0)
    pooled1 = jnp.concatenate(
        [jnp.maximum(act1[:, (2 * wo) * C1:(2 * wo) * C1 + C1],
                     act1[:, (2 * wo + 1) * C1:(2 * wo + 1) * C1 + C1])
         for wo in range(W2)], axis=1)                     # (10, 96), lanes wo*16+c

    # ---- scatter pooled layer1 output into a parity-split, zero-padded VMEM
    #      scratch: pad1e[q, wp*16+c] = P1pad[2q, wp, c],  pad1o -> odd rows ----
    pad1e_ref[...] = jnp.zeros_like(pad1e_ref)
    pad1o_ref[...] = jnp.zeros_like(pad1o_ref)
    pad1e_ref[1:6, 2 * C1:8 * C1] = pooled1[0:5, :]        # even pooled rows (par=0)
    pad1o_ref[1:6, 2 * C1:8 * C1] = pooled1[5:10, :]       # odd pooled rows  (par=1)

    # ---- layer 2: conv (BN scale folded) as 5 shift-matmuls ------------------
    def rows_at(q):
        # padded layer2-input rows 2*ho2 + q for ho2 = 0..4, as a (5, 160) slab
        ref = pad1o_ref if (q & 1) else pad1e_ref
        off = q >> 1
        return ref[off:off + 5, :]

    c2 = None
    for kh in range(K):
        a2 = jnp.concatenate([rows_at(kh), rows_at(kh + 1)], axis=0)   # (10, 160)
        part = jnp.dot(a2, t2_ref[kh], preferred_element_type=f32)     # (10, 192)
        c2 = part if c2 is None else c2 + part

    m2 = jnp.maximum(c2[0:5, :], c2[5:10, :])              # pool over dy2
    act2 = jnp.maximum(m2 + sh2_ref[...], 0.0)
    y = jnp.concatenate(
        [jnp.maximum(act2[:, (2 * wo) * C2:(2 * wo) * C2 + C2],
                     act2[:, (2 * wo + 1) * C2:(2 * wo + 1) * C2 + C2])
         for wo in range(W3)], axis=1)                     # (5, 96), lanes wo*32+c

    # ---- fc (weight columns pre-permuted in the wrapper) ---------------------
    acc = fcb_ref[...]                                     # (1, 7)
    for ho in range(H3):
        acc = acc + jnp.dot(y[ho:ho + 1, :], u_ref[ho], preferred_element_type=f32)
    out_ref[0] = acc


# ------------------------------ full forward ------------------------------- #

def convnet_forward(params, x_nchw):
    (w1, b1, g1, be1, rm1, rv1) = params["layer1"]
    (w2, b2, g2, be2, rm2, rv2) = params["layer2"]
    fcw, fcb = params["fc_w"], params["fc_b"]
    N = x_nchw.shape[0]

    # Fold conv bias + inference-mode BN into per-channel scale (into weights)
    # and shift (kernel epilogue).
    s1 = g1 / jnp.sqrt(rv1 + EPS)
    sh1 = (b1 - rm1) * s1 + be1                            # (16,)
    w1f = w1[:, 0] * s1[:, None, None]                     # (16, 5, 5)  [co, kh, kw]
    s2 = g2 / jnp.sqrt(rv2 + EPS)
    sh2 = (b2 - rm2) * s2 + be2                            # (32,)
    w2f = w2 * s2[:, None, None, None]                     # (32, 16, 5, 5)

    # Toeplitz expansion over the padded-W axis (constant 0/1 selectors), so
    # each conv becomes 5 accumulating matmuls over the kh shift only.
    sel1 = np.zeros((K, W1 + 4, W1), np.float32)           # (5, 16, 12)
    sel2 = np.zeros((K, WPAD2, W2), np.float32)            # (5, 10, 6)
    for kw in range(K):
        sel1[kw, kw + np.arange(W1), np.arange(W1)] = 1.0
        sel2[kw, kw + np.arange(W2), np.arange(W2)] = 1.0
    t1 = jnp.einsum('kpw,ohk->hpwo', sel1, w1f).reshape(K, W1 + 4, W1 * C1)
    t2 = jnp.einsum('kpw,ochk->hpcwo', sel2, w2f).reshape(K, WPAD2 * C1, W2 * C2)
    sh1t = jnp.tile(sh1, W1).reshape(1, W1 * C1)           # (1, 192) lanes w*16+c
    sh2t = jnp.tile(sh2, W2).reshape(1, W2 * C2)           # (1, 192) lanes w*32+c

    # fc weights permuted once so the (ho, wo*32+c) layout feeds it directly
    # (PyTorch flattens NCHW: feature = c*15 + ho*3 + wo).
    u = jnp.transpose(fcw.reshape(NUM_CLASSES, C2, H3, W3),
                      (2, 3, 1, 0)).reshape(H3, W3 * C2, NUM_CLASSES)  # (5, 96, 7)
    fcb2 = fcb.reshape(1, NUM_CLASSES)

    # Input: pad once, then 5 row-shifted copies in (dy, parity, hh) row order
    # (static strided slices + concat only -- no gathers).
    xpad = jnp.pad(x_nchw[:, 0], ((0, 0), (2, 2), (2, 2)))           # (N, 24, 16)
    a1 = jnp.stack([
        jnp.concatenate([xpad[:, (2 * par + dy + kh):(2 * par + dy + kh) + 17:4, :]
                         for dy in (0, 1) for par in (0, 1)], axis=1)
        for kh in range(K)], axis=1)                                  # (N, 5, 20, 16)

    out = pl.pallas_call(
        _convnet_kernel,
        out_shape=jax.ShapeDtypeStruct((N, 1, NUM_CLASSES), jnp.float32),
        grid=(N,),
        in_specs=[
            pl.BlockSpec((1, K, H1, W1 + 4), lambda n: (n, 0, 0, 0)),   # a1
            pl.BlockSpec((K, W1 + 4, W1 * C1), lambda n: (0, 0, 0)),    # t1
            pl.BlockSpec((1, W1 * C1), lambda n: (0, 0)),               # sh1t
            pl.BlockSpec((K, WPAD2 * C1, W2 * C2), lambda n: (0, 0, 0)),  # t2
            pl.BlockSpec((1, W2 * C2), lambda n: (0, 0)),               # sh2t
            pl.BlockSpec((H3, W3 * C2, NUM_CLASSES), lambda n: (0, 0, 0)),  # u
            pl.BlockSpec((1, NUM_CLASSES), lambda n: (0, 0)),           # fcb
        ],
        out_specs=pl.BlockSpec((1, 1, NUM_CLASSES), lambda n: (n, 0, 0)),
        scratch_shapes=[pltpu.VMEM((7, WPAD2 * C1), jnp.float32),   # pad1 even rows
                        pltpu.VMEM((7, WPAD2 * C1), jnp.float32)],  # pad1 odd rows
        compiler_params=pltpu.CompilerParams(dimension_semantics=("parallel",)),
    )(a1, t1, sh1t, t2, sh2t, u, fcb2)
    return out.reshape(N, NUM_CLASSES)


# ------------------------------ params / main ------------------------------ #

def init_params(key):
    ks = jax.random.split(key, 4)

    def conv_layer(k, cin, cout, ksize=5):
        kk = jax.random.split(k, 6)
        w = 0.1 * jax.random.normal(kk[0], (cout, cin, ksize, ksize), jnp.float32)
        b = 0.1 * jax.random.normal(kk[1], (cout,), jnp.float32)
        gamma = 1.0 + 0.1 * jax.random.normal(kk[2], (cout,), jnp.float32)
        beta = 0.1 * jax.random.normal(kk[3], (cout,), jnp.float32)
        rmean = 0.1 * jax.random.normal(kk[4], (cout,), jnp.float32)
        rvar = 1.0 + 0.1 * jnp.abs(jax.random.normal(kk[5], (cout,), jnp.float32))
        return (w, b, gamma, beta, rmean, rvar)

    fc_w = 0.05 * jax.random.normal(ks[2], (NUM_CLASSES, C2 * H3 * W3), jnp.float32)
    fc_b = 0.05 * jax.random.normal(ks[3], (NUM_CLASSES,), jnp.float32)
    return {"layer1": conv_layer(ks[0], 1, C1),
            "layer2": conv_layer(ks[1], C1, C2),
            "fc_w": fc_w, "fc_b": fc_b}


if __name__ == "__main__":
    key = jax.random.PRNGKey(0)
    pkey, xkey = jax.random.split(key)
    params = init_params(pkey)
    # (N=2, C=1, H=20, W=12): two 2x2 pools -> 5x3 spatial, 32*5*3 = 480 -> fc.
    x = jax.random.normal(xkey, (2, 1, 20, 12), jnp.float32)
    out = jax.jit(convnet_forward)(params, x)
    jax.block_until_ready(out)
    assert out.shape == (2, NUM_CLASSES) and out.dtype == jnp.float32
    print("KERNEL_OK")
</pallas_src>

<mosaic_0001>
module attributes {stable_mosaic.version = 11 : i64} {
  func.func @_convnet_kernel(%arg0: i32, %arg1: memref<1x5x20x16xf32, #tpu.memory_space<vmem>>, %arg2: memref<5x16x192xf32, #tpu.memory_space<vmem>>, %arg3: memref<1x192xf32, #tpu.memory_space<vmem>>, %arg4: memref<5x160x192xf32, #tpu.memory_space<vmem>>, %arg5: memref<1x192xf32, #tpu.memory_space<vmem>>, %arg6: memref<5x96x7xf32, #tpu.memory_space<vmem>>, %arg7: memref<1x7xf32, #tpu.memory_space<vmem>>, %arg8: memref<1x1x7xf32, #tpu.memory_space<vmem>>, %arg9: memref<7x160xf32, #tpu.memory_space<vmem>>, %arg10: memref<7x160xf32, #tpu.memory_space<vmem>>) attributes {dimension_semantics = [#tpu.dimension_semantics<parallel>], iteration_bounds = array<i64: 2>, scalar_prefetch = 0 : i64, scratch_operands = 2 : i64, tpu.core_type = #tpu.core_type<tc>, window_params = [{transform_indices = @transform_0, window_bounds = array<i64: 1, 5, 20, 16>}, {pipeline_mode = #tpu.pipeline_mode<synchronous>, transform_indices = @transform_1, window_bounds = array<i64: 5, 16, 192>}, {pipeline_mode = #tpu.pipeline_mode<synchronous>, transform_indices = @transform_2, window_bounds = array<i64: 1, 192>}, {pipeline_mode = #tpu.pipeline_mode<synchronous>, transform_indices = @transform_3, window_bounds = array<i64: 5, 160, 192>}, {pipeline_mode = #tpu.pipeline_mode<synchronous>, transform_indices = @transform_4, window_bounds = array<i64: 1, 192>}, {pipeline_mode = #tpu.pipeline_mode<synchronous>, transform_indices = @transform_5, window_bounds = array<i64: 5, 96, 7>}, {pipeline_mode = #tpu.pipeline_mode<synchronous>, transform_indices = @transform_6, window_bounds = array<i64: 1, 7>}, {transform_indices = @transform_7, window_bounds = array<i64: 1, 1, 7>}]} {
    %c0 = arith.constant 0 : index
    %c0_0 = arith.constant 0 : index
    %c0_1 = arith.constant 0 : index
    %c0_2 = arith.constant 0 : index
    %0 = vector.load %arg1[%c0, %c0_0, %c0_1, %c0_2] : memref<1x5x20x16xf32, #tpu.memory_space<vmem>>, vector<1x1x20x16xf32>
    %1 = vector.shape_cast %0 : vector<1x1x20x16xf32> to vector<20x16xf32>
    %c0_3 = arith.constant 0 : index
    %c0_4 = arith.constant 0 : index
    %c0_5 = arith.constant 0 : index
    %2 = vector.load %arg2[%c0_3, %c0_4, %c0_5] : memref<5x16x192xf32, #tpu.memory_space<vmem>>, vector<1x16x192xf32>
    %3 = vector.shape_cast %2 : vector<1x16x192xf32> to vector<16x192xf32>
    %cst = arith.constant dense<0.000000e+00> : vector<20x192xf32>
    %4 = tpu.matmul %1, %3, %cst {dimension_numbers = #tpu.dot_dimension_numbers<[1], [0], [0], [1], [0, 0, 1, 1], [], []>} : vector<20x16xf32>, vector<16x192xf32>, vector<20x192xf32> -> vector<20x192xf32>
    %c0_6 = arith.constant 0 : index
    %c1 = arith.constant 1 : index
    %c0_7 = arith.constant 0 : index
    %c0_8 = arith.constant 0 : index
    %5 = vector.load %arg1[%c0_6, %c1, %c0_7, %c0_8] : memref<1x5x20x16xf32, #tpu.memory_space<vmem>>, vector<1x1x20x16xf32>
    %6 = vector.shape_cast %5 : vector<1x1x20x16xf32> to vector<20x16xf32>
    %c1_9 = arith.constant 1 : index
    %c0_10 = arith.constant 0 : index
    %c0_11 = arith.constant 0 : index
    %7 = vector.load %arg2[%c1_9, %c0_10, %c0_11] : memref<5x16x192xf32, #tpu.memory_space<vmem>>, vector<1x16x192xf32>
    %8 = vector.shape_cast %7 : vector<1x16x192xf32> to vector<16x192xf32>
    %cst_12 = arith.constant dense<0.000000e+00> : vector<20x192xf32>
    %9 = tpu.matmul %6, %8, %cst_12 {dimension_numbers = #tpu.dot_dimension_numbers<[1], [0], [0], [1], [0, 0, 1, 1], [], []>} : vector<20x16xf32>, vector<16x192xf32>, vector<20x192xf32> -> vector<20x192xf32>
    %10 = arith.addf %4, %9 : vector<20x192xf32>
    %c0_13 = arith.constant 0 : index
    %c2 = arith.constant 2 : index
    %c0_14 = arith.constant 0 : index
    %c0_15 = arith.constant 0 : index
    %11 = vector.load %arg1[%c0_13, %c2, %c0_14, %c0_15] : memref<1x5x20x16xf32, #tpu.memory_space<vmem>>, vector<1x1x20x16xf32>
    %12 = vector.shape_cast %11 : vector<1x1x20x16xf32> to vector<20x16xf32>
    %c2_16 = arith.constant 2 : index
    %c0_17 = arith.constant 0 : index
    %c0_18 = arith.constant 0 : index
    %13 = vector.load %arg2[%c2_16, %c0_17, %c0_18] : memref<5x16x192xf32, #tpu.memory_space<vmem>>, vector<1x16x192xf32>
    %14 = vector.shape_cast %13 : vector<1x16x192xf32> to vector<16x192xf32>
    %cst_19 = arith.constant dense<0.000000e+00> : vector<20x192xf32>
    %15 = tpu.matmul %12, %14, %cst_19 {dimension_numbers = #tpu.dot_dimension_numbers<[1], [0], [0], [1], [0, 0, 1, 1], [], []>} : vector<20x16xf32>, vector<16x192xf32>, vector<20x192xf32> -> vector<20x192xf32>
    %16 = arith.addf %10, %15 : vector<20x192xf32>
    %c0_20 = arith.constant 0 : index
    %c3 = arith.constant 3 : index
    %c0_21 = arith.constant 0 : index
    %c0_22 = arith.constant 0 : index
    %17 = vector.load %arg1[%c0_20, %c3, %c0_21, %c0_22] : memref<1x5x20x16xf32, #tpu.memory_space<vmem>>, vector<1x1x20x16xf32>
    %18 = vector.shape_cast %17 : vector<1x1x20x16xf32> to vector<20x16xf32>
    %c3_23 = arith.constant 3 : index
    %c0_24 = arith.constant 0 : index
    %c0_25 = arith.constant 0 : index
    %19 = vector.load %arg2[%c3_23, %c0_24, %c0_25] : memref<5x16x192xf32, #tpu.memory_space<vmem>>, vector<1x16x192xf32>
    %20 = vector.shape_cast %19 : vector<1x16x192xf32> to vector<16x192xf32>
    %cst_26 = arith.constant dense<0.000000e+00> : vector<20x192xf32>
    %21 = tpu.matmul %18, %20, %cst_26 {dimension_numbers = #tpu.dot_dimension_numbers<[1], [0], [0], [1], [0, 0, 1, 1], [], []>} : vector<20x16xf32>, vector<16x192xf32>, vector<20x192xf32> -> vector<20x192xf32>
    %22 = arith.addf %16, %21 : vector<20x192xf32>
    %c0_27 = arith.constant 0 : index
    %c4 = arith.constant 4 : index
    %c0_28 = arith.constant 0 : index
    %c0_29 = arith.constant 0 : index
    %23 = vector.load %arg1[%c0_27, %c4, %c0_28, %c0_29] : memref<1x5x20x16xf32, #tpu.memory_space<vmem>>, vector<1x1x20x16xf32>
    %24 = vector.shape_cast %23 : vector<1x1x20x16xf32> to vector<20x16xf32>
    %c4_30 = arith.constant 4 : index
    %c0_31 = arith.constant 0 : index
    %c0_32 = arith.constant 0 : index
    %25 = vector.load %arg2[%c4_30, %c0_31, %c0_32] : memref<5x16x192xf32, #tpu.memory_space<vmem>>, vector<1x16x192xf32>
    %26 = vector.shape_cast %25 : vector<1x16x192xf32> to vector<16x192xf32>
    %cst_33 = arith.constant dense<0.000000e+00> : vector<20x192xf32>
    %27 = tpu.matmul %24, %26, %cst_33 {dimension_numbers = #tpu.dot_dimension_numbers<[1], [0], [0], [1], [0, 0, 1, 1], [], []>} : vector<20x16xf32>, vector<16x192xf32>, vector<20x192xf32> -> vector<20x192xf32>
    %28 = arith.addf %22, %27 : vector<20x192xf32>
    %29 = vector.extract_strided_slice %28 {offsets = [0, 0], sizes = [10, 192], strides = [1, 1]} : vector<20x192xf32> to vector<10x192xf32>
    %30 = vector.extract_strided_slice %28 {offsets = [10, 0], sizes = [10, 192], strides = [1, 1]} : vector<20x192xf32> to vector<10x192xf32>
    %31 = arith.maximumf %29, %30 : vector<10x192xf32>
    %c0_34 = arith.constant 0 : index
    %c0_35 = arith.constant 0 : index
    %32 = vector.load %arg3[%c0_34, %c0_35] : memref<1x192xf32, #tpu.memory_space<vmem>>, vector<1x192xf32>
    %33 = vector.broadcast %32 : vector<1x192xf32> to vector<10x192xf32>
    %34 = arith.addf %31, %33 : vector<10x192xf32>
    %cst_36 = arith.constant 0.000000e+00 : f32
    %35 = vector.broadcast %cst_36 : f32 to vector<10x192xf32>
    %36 = arith.maximumf %34, %35 : vector<10x192xf32>
    %37 = vector.extract_strided_slice %36 {offsets = [0, 0], sizes = [10, 16], strides = [1, 1]} : vector<10x192xf32> to vector<10x16xf32>
    %38 = vector.extract_strided_slice %36 {offsets = [0, 16], sizes = [10, 16], strides = [1, 1]} : vector<10x192xf32> to vector<10x16xf32>
    %39 = arith.maximumf %37, %38 : vector<10x16xf32>
    %40 = vector.extract_strided_slice %36 {offsets = [0, 32], sizes = [10, 16], strides = [1, 1]} : vector<10x192xf32> to vector<10x16xf32>
    %41 = vector.extract_strided_slice %36 {offsets = [0, 48], sizes = [10, 16], strides = [1, 1]} : vector<10x192xf32> to vector<10x16xf32>
    %42 = arith.maximumf %40, %41 : vector<10x16xf32>
    %43 = vector.extract_strided_slice %36 {offsets = [0, 64], sizes = [10, 16], strides = [1, 1]} : vector<10x192xf32> to vector<10x16xf32>
    %44 = vector.extract_strided_slice %36 {offsets = [0, 80], sizes = [10, 16], strides = [1, 1]} : vector<10x192xf32> to vector<10x16xf32>
    %45 = arith.maximumf %43, %44 : vector<10x16xf32>
    %46 = vector.extract_strided_slice %36 {offsets = [0, 96], sizes = [10, 16], strides = [1, 1]} : vector<10x192xf32> to vector<10x16xf32>
    %47 = vector.extract_strided_slice %36 {offsets = [0, 112], sizes = [10, 16], strides = [1, 1]} : vector<10x192xf32> to vector<10x16xf32>
    %48 = arith.maximumf %46, %47 : vector<10x16xf32>
    %49 = vector.extract_strided_slice %36 {offsets = [0, 128], sizes = [10, 16], strides = [1, 1]} : vector<10x192xf32> to vector<10x16xf32>
    %50 = vector.extract_strided_slice %36 {offsets = [0, 144], sizes = [10, 16], strides = [1, 1]} : vector<10x192xf32> to vector<10x16xf32>
    %51 = arith.maximumf %49, %50 : vector<10x16xf32>
    %52 = vector.extract_strided_slice %36 {offsets = [0, 160], sizes = [10, 16], strides = [1, 1]} : vector<10x192xf32> to vector<10x16xf32>
    %53 = vector.extract_strided_slice %36 {offsets = [0, 176], sizes = [10, 16], strides = [1, 1]} : vector<10x192xf32> to vector<10x16xf32>
    %54 = arith.maximumf %52, %53 : vector<10x16xf32>
    %55 = tpu.concatenate %39, %42, %45, %48, %51, %54 in 1 : vector<10x16xf32>, vector<10x16xf32>, vector<10x16xf32>, vector<10x16xf32>, vector<10x16xf32>, vector<10x16xf32> -> vector<10x96xf32>
    %cst_37 = arith.constant 0.000000e+00 : f32
    %56 = vector.broadcast %cst_37 : f32 to vector<7x160xf32>
    %c0_38 = arith.constant 0 : index
    %c0_39 = arith.constant 0 : index
    %57 = vector.load %arg9[%c0_38, %c0_39] : memref<7x160xf32, #tpu.memory_space<vmem>>, vector<7x160xf32>
    tpu.vector_store %arg9[%c0_38, %c0_39], %56 {strides = array<i32>} : memref<7x160xf32, #tpu.memory_space<vmem>>, vector<7x160xf32>,
    %cst_40 = arith.constant 0.000000e+00 : f32
    %58 = vector.broadcast %cst_40 : f32 to vector<7x160xf32>
    %c0_41 = arith.constant 0 : index
    %c0_42 = arith.constant 0 : index
    %59 = vector.load %arg10[%c0_41, %c0_42] : memref<7x160xf32, #tpu.memory_space<vmem>>, vector<7x160xf32>
    tpu.vector_store %arg10[%c0_41, %c0_42], %58 {strides = array<i32>} : memref<7x160xf32, #tpu.memory_space<vmem>>, vector<7x160xf32>,
    %60 = vector.extract_strided_slice %55 {offsets = [0, 0], sizes = [5, 96], strides = [1, 1]} : vector<10x96xf32> to vector<5x96xf32>
    %c1_43 = arith.constant 1 : index
    %c32 = arith.constant 32 : index
    %61 = vector.load %arg9[%c1_43, %c32] : memref<7x160xf32, #tpu.memory_space<vmem>>, vector<5x96xf32>
    tpu.vector_store %arg9[%c1_43, %c32], %60 {strides = array<i32>} : memref<7x160xf32, #tpu.memory_space<vmem>>, vector<5x96xf32>,
    %62 = vector.extract_strided_slice %55 {offsets = [5, 0], sizes = [5, 96], strides = [1, 1]} : vector<10x96xf32> to vector<5x96xf32>
    %c1_44 = arith.constant 1 : index
    %c32_45 = arith.constant 32 : index
    %63 = vector.load %arg10[%c1_44, %c32_45] : memref<7x160xf32, #tpu.memory_space<vmem>>, vector<5x96xf32>
    tpu.vector_store %arg10[%c1_44, %c32_45], %62 {strides = array<i32>} : memref<7x160xf32, #tpu.memory_space<vmem>>, vector<5x96xf32>,
    %c0_46 = arith.constant 0 : index
    %c0_47 = arith.constant 0 : index
    %64 = vector.load %arg9[%c0_46, %c0_47] : memref<7x160xf32, #tpu.memory_space<vmem>>, vector<5x160xf32>
    %c0_48 = arith.constant 0 : index
    %c0_49 = arith.constant 0 : index
    %65 = vector.load %arg10[%c0_48, %c0_49] : memref<7x160xf32, #tpu.memory_space<vmem>>, vector<5x160xf32>
    %66 = tpu.concatenate %64, %65 in 0 : vector<5x160xf32>, vector<5x160xf32> -> vector<10x160xf32>
    %c0_50 = arith.constant 0 : index
    %c0_51 = arith.constant 0 : index
    %c0_52 = arith.constant 0 : index
    %67 = vector.load %arg4[%c0_50, %c0_51, %c0_52] : memref<5x160x192xf32, #tpu.memory_space<vmem>>, vector<1x160x192xf32>
    %68 = vector.shape_cast %67 : vector<1x160x192xf32> to vector<160x192xf32>
    %cst_53 = arith.constant dense<0.000000e+00> : vector<10x192xf32>
    %69 = tpu.matmul %66, %68, %cst_53 {dimension_numbers = #tpu.dot_dimension_numbers<[1], [0], [0], [1], [0, 0, 1, 1], [], []>} : vector<10x160xf32>, vector<160x192xf32>, vector<10x192xf32> -> vector<10x192xf32>
    %c0_54 = arith.constant 0 : index
    %c0_55 = arith.constant 0 : index
    %70 = vector.load %arg10[%c0_54, %c0_55] : memref<7x160xf32, #tpu.memory_space<vmem>>, vector<5x160xf32>
    %c1_56 = arith.constant 1 : index
    %c0_57 = arith.constant 0 : index
    %71 = vector.load %arg9[%c1_56, %c0_57] : memref<7x160xf32, #tpu.memory_space<vmem>>, vector<5x160xf32>
    %72 = tpu.concatenate %70, %71 in 0 : vector<5x160xf32>, vector<5x160xf32> -> vector<10x160xf32>
    %c1_58 = arith.constant 1 : index
    %c0_59 = arith.constant 0 : index
    %c0_60 = arith.constant 0 : index
    %73 = vector.load %arg4[%c1_58, %c0_59, %c0_60] : memref<5x160x192xf32, #tpu.memory_space<vmem>>, vector<1x160x192xf32>
    %74 = vector.shape_cast %73 : vector<1x160x192xf32> to vector<160x192xf32>
    %cst_61 = arith.constant dense<0.000000e+00> : vector<10x192xf32>
    %75 = tpu.matmul %72, %74, %cst_61 {dimension_numbers = #tpu.dot_dimension_numbers<[1], [0], [0], [1], [0, 0, 1, 1], [], []>} : vector<10x160xf32>, vector<160x192xf32>, vector<10x192xf32> -> vector<10x192xf32>
    %76 = arith.addf %69, %75 : vector<10x192xf32>
    %c1_62 = arith.constant 1 : index
    %c0_63 = arith.constant 0 : index
    %77 = vector.load %arg9[%c1_62, %c0_63] : memref<7x160xf32, #tpu.memory_space<vmem>>, vector<5x160xf32>
    %c1_64 = arith.constant 1 : index
    %c0_65 = arith.constant 0 : index
    %78 = vector.load %arg10[%c1_64, %c0_65] : memref<7x160xf32, #tpu.memory_space<vmem>>, vector<5x160xf32>
    %79 = tpu.concatenate %77, %78 in 0 : vector<5x160xf32>, vector<5x160xf32> -> vector<10x160xf32>
    %c2_66 = arith.constant 2 : index
    %c0_67 = arith.constant 0 : index
    %c0_68 = arith.constant 0 : index
    %80 = vector.load %arg4[%c2_66, %c0_67, %c0_68] : memref<5x160x192xf32, #tpu.memory_space<vmem>>, vector<1x160x192xf32>
    %81 = vector.shape_cast %80 : vector<1x160x192xf32> to vector<160x192xf32>
    %cst_69 = arith.constant dense<0.000000e+00> : vector<10x192xf32>
    %82 = tpu.matmul %79, %81, %cst_69 {dimension_numbers = #tpu.dot_dimension_numbers<[1], [0], [0], [1], [0, 0, 1, 1], [], []>} : vector<10x160xf32>, vector<160x192xf32>, vector<10x192xf32> -> vector<10x192xf32>
    %83 = arith.addf %76, %82 : vector<10x192xf32>
    %c1_70 = arith.constant 1 : index
    %c0_71 = arith.constant 0 : index
    %84 = vector.load %arg10[%c1_70, %c0_71] : memref<7x160xf32, #tpu.memory_space<vmem>>, vector<5x160xf32>
    %c2_72 = arith.constant 2 : index
    %c0_73 = arith.constant 0 : index
    %85 = vector.load %arg9[%c2_72, %c0_73] : memref<7x160xf32, #tpu.memory_space<vmem>>, vector<5x160xf32>
    %86 = tpu.concatenate %84, %85 in 0 : vector<5x160xf32>, vector<5x160xf32> -> vector<10x160xf32>
    %c3_74 = arith.constant 3 : index
    %c0_75 = arith.constant 0 : index
    %c0_76 = arith.constant 0 : index
    %87 = vector.load %arg4[%c3_74, %c0_75, %c0_76] : memref<5x160x192xf32, #tpu.memory_space<vmem>>, vector<1x160x192xf32>
    %88 = vector.shape_cast %87 : vector<1x160x192xf32> to vector<160x192xf32>
    %cst_77 = arith.constant dense<0.000000e+00> : vector<10x192xf32>
    %89 = tpu.matmul %86, %88, %cst_77 {dimension_numbers = #tpu.dot_dimension_numbers<[1], [0], [0], [1], [0, 0, 1, 1], [], []>} : vector<10x160xf32>, vector<160x192xf32>, vector<10x192xf32> -> vector<10x192xf32>
    %90 = arith.addf %83, %89 : vector<10x192xf32>
    %c2_78 = arith.constant 2 : index
    %c0_79 = arith.constant 0 : index
    %91 = vector.load %arg9[%c2_78, %c0_79] : memref<7x160xf32, #tpu.memory_space<vmem>>, vector<5x160xf32>
    %c2_80 = arith.constant 2 : index
    %c0_81 = arith.constant 0 : index
    %92 = vector.load %arg10[%c2_80, %c0_81] : memref<7x160xf32, #tpu.memory_space<vmem>>, vector<5x160xf32>
    %93 = tpu.concatenate %91, %92 in 0 : vector<5x160xf32>, vector<5x160xf32> -> vector<10x160xf32>
    %c4_82 = arith.constant 4 : index
    %c0_83 = arith.constant 0 : index
    %c0_84 = arith.constant 0 : index
    %94 = vector.load %arg4[%c4_82, %c0_83, %c0_84] : memref<5x160x192xf32, #tpu.memory_space<vmem>>, vector<1x160x192xf32>
    %95 = vector.shape_cast %94 : vector<1x160x192xf32> to vector<160x192xf32>
    %cst_85 = arith.constant dense<0.000000e+00> : vector<10x192xf32>
    %96 = tpu.matmul %93, %95, %cst_85 {dimension_numbers = #tpu.dot_dimension_numbers<[1], [0], [0], [1], [0, 0, 1, 1], [], []>} : vector<10x160xf32>, vector<160x192xf32>, vector<10x192xf32> -> vector<10x192xf32>
    %97 = arith.addf %90, %96 : vector<10x192xf32>
    %98 = vector.extract_strided_slice %97 {offsets = [0, 0], sizes = [5, 192], strides = [1, 1]} : vector<10x192xf32> to vector<5x192xf32>
    %99 = vector.extract_strided_slice %97 {offsets = [5, 0], sizes = [5, 192], strides = [1, 1]} : vector<10x192xf32> to vector<5x192xf32>
    %100 = arith.maximumf %98, %99 : vector<5x192xf32>
    %c0_86 = arith.constant 0 : index
    %c0_87 = arith.constant 0 : index
    %101 = vector.load %arg5[%c0_86, %c0_87] : memref<1x192xf32, #tpu.memory_space<vmem>>, vector<1x192xf32>
    %102 = vector.broadcast %101 : vector<1x192xf32> to vector<5x192xf32>
    %103 = arith.addf %100, %102 : vector<5x192xf32>
    %cst_88 = arith.constant 0.000000e+00 : f32
    %104 = vector.broadcast %cst_88 : f32 to vector<5x192xf32>
    %105 = arith.maximumf %103, %104 : vector<5x192xf32>
    %106 = vector.extract_strided_slice %105 {offsets = [0, 0], sizes = [5, 32], strides = [1, 1]} : vector<5x192xf32> to vector<5x32xf32>
    %107 = vector.extract_strided_slice %105 {offsets = [0, 32], sizes = [5, 32], strides = [1, 1]} : vector<5x192xf32> to vector<5x32xf32>
    %108 = arith.maximumf %106, %107 : vector<5x32xf32>
    %109 = vector.extract_strided_slice %105 {offsets = [0, 64], sizes = [5, 32], strides = [1, 1]} : vector<5x192xf32> to vector<5x32xf32>
    %110 = vector.extract_strided_slice %105 {offsets = [0, 96], sizes = [5, 32], strides = [1, 1]} : vector<5x192xf32> to vector<5x32xf32>
    %111 = arith.maximumf %109, %110 : vector<5x32xf32>
    %112 = vector.extract_strided_slice %105 {offsets = [0, 128], sizes = [5, 32], strides = [1, 1]} : vector<5x192xf32> to vector<5x32xf32>
    %113 = vector.extract_strided_slice %105 {offsets = [0, 160], sizes = [5, 32], strides = [1, 1]} : vector<5x192xf32> to vector<5x32xf32>
    %114 = arith.maximumf %112, %113 : vector<5x32xf32>
    %115 = tpu.concatenate %108, %111, %114 in 1 : vector<5x32xf32>, vector<5x32xf32>, vector<5x32xf32> -> vector<5x96xf32>
    %c0_89 = arith.constant 0 : index
    %c0_90 = arith.constant 0 : index
    %116 = vector.load %arg7[%c0_89, %c0_90] : memref<1x7xf32, #tpu.memory_space<vmem>>, vector<1x7xf32>
    %117 = vector.extract_strided_slice %115 {offsets = [0, 0], sizes = [1, 96], strides = [1, 1]} : vector<5x96xf32> to vector<1x96xf32>
    %c0_91 = arith.constant 0 : index
    %c0_92 = arith.constant 0 : index
    %c0_93 = arith.constant 0 : index
    %118 = vector.load %arg6[%c0_91, %c0_92, %c0_93] : memref<5x96x7xf32, #tpu.memory_space<vmem>>, vector<1x96x7xf32>
    %119 = vector.shape_cast %118 : vector<1x96x7xf32> to vector<96x7xf32>
    %cst_94 = arith.constant dense<0.000000e+00> : vector<1x7xf32>
    %120 = tpu.matmul %117, %119, %cst_94 {dimension_numbers = #tpu.dot_dimension_numbers<[1], [0], [0], [1], [0, 0, 1, 1], [], []>} : vector<1x96xf32>, vector<96x7xf32>, vector<1x7xf32> -> vector<1x7xf32>
    %121 = arith.addf %116, %120 : vector<1x7xf32>
    %122 = vector.extract_strided_slice %115 {offsets = [1, 0], sizes = [1, 96], strides = [1, 1]} : vector<5x96xf32> to vector<1x96xf32>
    %c1_95 = arith.constant 1 : index
    %c0_96 = arith.constant 0 : index
    %c0_97 = arith.constant 0 : index
    %123 = vector.load %arg6[%c1_95, %c0_96, %c0_97] : memref<5x96x7xf32, #tpu.memory_space<vmem>>, vector<1x96x7xf32>
    %124 = vector.shape_cast %123 : vector<1x96x7xf32> to vector<96x7xf32>
    %cst_98 = arith.constant dense<0.000000e+00> : vector<1x7xf32>
    %125 = tpu.matmul %122, %124, %cst_98 {dimension_numbers = #tpu.dot_dimension_numbers<[1], [0], [0], [1], [0, 0, 1, 1], [], []>} : vector<1x96xf32>, vector<96x7xf32>, vector<1x7xf32> -> vector<1x7xf32>
    %126 = arith.addf %121, %125 : vector<1x7xf32>
    %127 = vector.extract_strided_slice %115 {offsets = [2, 0], sizes = [1, 96], strides = [1, 1]} : vector<5x96xf32> to vector<1x96xf32>
    %c2_99 = arith.constant 2 : index
    %c0_100 = arith.constant 0 : index
    %c0_101 = arith.constant 0 : index
    %128 = vector.load %arg6[%c2_99, %c0_100, %c0_101] : memref<5x96x7xf32, #tpu.memory_space<vmem>>, vector<1x96x7xf32>
    %129 = vector.shape_cast %128 : vector<1x96x7xf32> to vector<96x7xf32>
    %cst_102 = arith.constant dense<0.000000e+00> : vector<1x7xf32>
    %130 = tpu.matmul %127, %129, %cst_102 {dimension_numbers = #tpu.dot_dimension_numbers<[1], [0], [0], [1], [0, 0, 1, 1], [], []>} : vector<1x96xf32>, vector<96x7xf32>, vector<1x7xf32> -> vector<1x7xf32>
    %131 = arith.addf %126, %130 : vector<1x7xf32>
    %132 = vector.extract_strided_slice %115 {offsets = [3, 0], sizes = [1, 96], strides = [1, 1]} : vector<5x96xf32> to vector<1x96xf32>
    %c3_103 = arith.constant 3 : index
    %c0_104 = arith.constant 0 : index
    %c0_105 = arith.constant 0 : index
    %133 = vector.load %arg6[%c3_103, %c0_104, %c0_105] : memref<5x96x7xf32, #tpu.memory_space<vmem>>, vector<1x96x7xf32>
    %134 = vector.shape_cast %133 : vector<1x96x7xf32> to vector<96x7xf32>
    %cst_106 = arith.constant dense<0.000000e+00> : vector<1x7xf32>
    %135 = tpu.matmul %132, %134, %cst_106 {dimension_numbers = #tpu.dot_dimension_numbers<[1], [0], [0], [1], [0, 0, 1, 1], [], []>} : vector<1x96xf32>, vector<96x7xf32>, vector<1x7xf32> -> vector<1x7xf32>
    %136 = arith.addf %131, %135 : vector<1x7xf32>
    %137 = vector.extract_strided_slice %115 {offsets = [4, 0], sizes = [1, 96], strides = [1, 1]} : vector<5x96xf32> to vector<1x96xf32>
    %c4_107 = arith.constant 4 : index
    %c0_108 = arith.constant 0 : index
    %c0_109 = arith.constant 0 : index
    %138 = vector.load %arg6[%c4_107, %c0_108, %c0_109] : memref<5x96x7xf32, #tpu.memory_space<vmem>>, vector<1x96x7xf32>
    %139 = vector.shape_cast %138 : vector<1x96x7xf32> to vector<96x7xf32>
    %cst_110 = arith.constant dense<0.000000e+00> : vector<1x7xf32>
    %140 = tpu.matmul %137, %139, %cst_110 {dimension_numbers = #tpu.dot_dimension_numbers<[1], [0], [0], [1], [0, 0, 1, 1], [], []>} : vector<1x96xf32>, vector<96x7xf32>, vector<1x7xf32> -> vector<1x7xf32>
    %141 = arith.addf %136, %140 : vector<1x7xf32>
    %c0_111 = arith.constant 0 : index
    %c0_112 = arith.constant 0 : index
    %c0_113 = arith.constant 0 : index
    %142 = vector.load %arg8[%c0_111, %c0_112, %c0_113] : memref<1x1x7xf32, #tpu.memory_space<vmem>>, vector<1x1x7xf32>
    %143 = vector.shape_cast %142 : vector<1x1x7xf32> to vector<1x7xf32>
    %144 = vector.shape_cast %141 : vector<1x7xf32> to vector<1x1x7xf32>
    tpu.vector_store %arg8[%c0_111, %c0_112, %c0_113], %144 {strides = array<i32>} : memref<1x1x7xf32, #tpu.memory_space<vmem>>, vector<1x1x7xf32>,
    return
  }
  func.func @transform_0(%arg0: i32) -> (i32, i32, i32, i32) {
    %c0_i32 = arith.constant 0 : i32
    %c0_i32_0 = arith.constant 0 : i32
    %c0_i32_1 = arith.constant 0 : i32
    %c0_i32_2 = arith.constant 0 : i32
    return %arg0, %c0_i32, %c0_i32_0, %c0_i32_1 : i32, i32, i32, i32
  }
  func.func @transform_1(%arg0: i32) -> (i32, i32, i32) {
    %c0_i32 = arith.constant 0 : i32
    %c0_i32_0 = arith.constant 0 : i32
    %c0_i32_1 = arith.constant 0 : i32
    %c0_i32_2 = arith.constant 0 : i32
    return %c0_i32, %c0_i32_0, %c0_i32_1 : i32, i32, i32
  }
  func.func @transform_2(%arg0: i32) -> (i32, i32) {
    %c0_i32 = arith.constant 0 : i32
    %c0_i32_0 = arith.constant 0 : i32
    %c0_i32_1 = arith.constant 0 : i32
    return %c0_i32, %c0_i32_0 : i32, i32
  }
  func.func @transform_3(%arg0: i32) -> (i32, i32, i32) {
    %c0_i32 = arith.constant 0 : i32
    %c0_i32_0 = arith.constant 0 : i32
    %c0_i32_1 = arith.constant 0 : i32
    %c0_i32_2 = arith.constant 0 : i32
    return %c0_i32, %c0_i32_0, %c0_i32_1 : i32, i32, i32
  }
  func.func @transform_4(%arg0: i32) -> (i32, i32) {
    %c0_i32 = arith.constant 0 : i32
    %c0_i32_0 = arith.constant 0 : i32
    %c0_i32_1 = arith.constant 0 : i32
    return %c0_i32, %c0_i32_0 : i32, i32
  }
  func.func @transform_5(%arg0: i32) -> (i32, i32, i32) {
    %c0_i32 = arith.constant 0 : i32
    %c0_i32_0 = arith.constant 0 : i32
    %c0_i32_1 = arith.constant 0 : i32
    %c0_i32_2 = arith.constant 0 : i32
    return %c0_i32, %c0_i32_0, %c0_i32_1 : i32, i32, i32
  }
  func.func @transform_6(%arg0: i32) -> (i32, i32) {
    %c0_i32 = arith.constant 0 : i32
    %c0_i32_0 = arith.constant 0 : i32
    %c0_i32_1 = arith.constant 0 : i32
    return %c0_i32, %c0_i32_0 : i32, i32
  }
  func.func @transform_7(%arg0: i32) -> (i32, i32, i32) {
    %c0_i32 = arith.constant 0 : i32
    %c0_i32_0 = arith.constant 0 : i32
    %c0_i32_1 = arith.constant 0 : i32
    return %arg0, %c0_i32, %c0_i32_0 : i32, i32, i32
  }
}

</mosaic_0001>

<bundles_post_ra>
// kernel: tile.13
= control target key start
LH: loop header
LB: loop body
LE: loop exit
PB: predicated region body
PF: predicated region fallthrough
CT: control target
= control target key end

     0   :  { %s28_s0 = inlined_call_operand.vmem [shape: f32[16], index: 0, kind: input, shape index: {}]   ;;  %s29_s1 = inlined_call_operand.vmem [shape: f32[12,16], index: 1, kind: output, shape index: {}]  }
   0x1   :  { %v4_v0 = vld [vmem:[%s28_s0] ss:$0 sm:$0xff] }
   0x2   :  { %5 = vst [vmem:[%s29_s1] sm:$0xff] %v4_v0 }
   0x3   :  { %8 = vst [vmem:[%s29_s1 + $0x8] sm:$0xff] %v4_v0 }

// kernel: tile.14
= control target key start
LH: loop header
LB: loop body
LE: loop exit
PB: predicated region body
PF: predicated region fallthrough
CT: control target
= control target key end

     0   :  { %s78_s10 = smov 112   ;;  %s79_s11 = smov 80   ;;  %vm4_vm0 = vcmask 130048   ;;  %vm10_vm1 = vcmask 1048448   ;;  %vm16_vm2 = vcmask 917248   ;;  %vm22_vm3 = vcmask 786048   ;;  %s125_s0 = inlined_call_operand.vmem [shape: f32[12,16], index: 0, kind: input, shape index: {}]   ;;  %s126_s1 = inlined_call_operand.vmem [shape: f32[1,192], index: 1, kind: output, shape index: {}]  }
   0x1   :  { %v63_v0 = vld [vmem:[%s125_s0 + $0x7] sm:$0x1]   ;;  %v65_v1 = vld [vmem:[%s125_s0 + $0x5] sm:$0x1]   ;;  %s31_s12 = smov 3  ;;  %s80_s15 = smov 48  }
   0x2   :  { %8 = vrot.lane.b32.xlu0 %v63_v0, %s78_s10  ;;  %20 = vrot.lane.b32.xlu1 %v65_v1, %s79_s11  ;;  %v67_v2 = vld [vmem:[%s125_s0 + $0x3] ss:$8 sm:%s31_s12]   ;;  %s38_s20 = smov 3  ;;  %s81_s21 = smov 96   ;;  %vm28_vm4 = vcmask 654848   ;;  %vm35_vm5 = vcmask 523648  }
   0x3   :  { %33 = vrot.lane.b32.xlu2 %v67_v2, %s80_s15  ;;  %v64_v3 = vld [vmem:[%s125_s0 + $0x6] sm:$0x1]   ;;  %v66_v4 = vld [vmem:[%s125_s0 + $0x4] sm:$0x1]   ;;  %s82_s22 = smov 64   ;;  %s45_s25 = smov 3 }
   0x4   :  { %v68_v5 = vld [vmem:[%s125_s0 + $0x2] ss:$8 sm:%s38_s20]   ;;  %s83_s26 = smov 32   ;;  %v69_v6 = vld [vmem:[%s125_s0 + $0x1] ss:$8 sm:%s45_s25]   ;;  %s84_s29 = smov 16  }
   0x5   :  { %s2_s30 = smov 3  ;;  %vm42_vm6 = vcmask 392448   ;;  %vm49_vm7 = vcmask 261248  }
   0x6   :  { %v3_v7 = vld [vmem:[%s125_s0] ss:$8 sm:%s2_s30]  }
   0x7   :  { %5 = vst.msk [vmem:[#allocation0] ss:$8 sm:$0x3] %vm4_vm0, %v3_v7  }
   0xa   :  { %14 = vrot.lane.b32.xlu0 %v64_v3, %s81_s21  ;;  %26 = vrot.lane.b32.xlu1 %v66_v4, %s82_s22 }
   0xb   :  { %40 = vrot.lane.b32.xlu2 %v68_v5, %s83_s26 }
  0x12   :  { %47 = vrot.lane.b32.xlu0 %v69_v6, %s84_s29 }
  0x5d   :  { %v34_v8 = vpop.permute.xlu2 %33  }
  0x65   :  { %v41_v9 = vpop.permute.xlu2 %40  }
  0x74   :  { %v9_v10 = vpop.permute.xlu0 %8   ;;  %v21_v11 = vpop.permute.xlu1 %20  }
  0x75   :  { %11 = vst.msk [vmem:[#allocation0] sm:$0x1] %vm10_vm1, %v9_v10  }
  0x7c   :  { %v15_v12 = vpop.permute.xlu0 %14   ;;  %v27_v13 = vpop.permute.xlu1 %26  }
  0x7d   :  { %17 = vst.msk [vmem:[#allocation0] sm:$0x1] %vm16_vm2, %v15_v12  }
  0x7e   :  { %23 = vst.msk [vmem:[#allocation0] sm:$0x1] %vm22_vm3, %v21_v11  }
  0x7f   :  { %29 = vst.msk [vmem:[#allocation0] sm:$0x1] %vm28_vm4, %v27_v13  }
  0x80   :  { %36 = vst.msk [vmem:[#allocation0] ss:$8 sm:$0x3] %vm35_vm5, %v34_v8  }
  0x81   :  { %43 = vst.msk [vmem:[#allocation0] ss:$8 sm:$0x3] %vm42_vm6, %v41_v9  }
  0x84   :  { %v48_v14 = vpop.permute.xlu0 %47  }
  0x85   :  { %50 = vst.msk [vmem:[#allocation0] ss:$8 sm:$0x3] %vm49_vm7, %v48_v14  }
  0x8c   :  { %v53_v15 = vld [vmem:[#allocation0] sm:$0x1]  ;;  %v58_v16 = vld [vmem:[#allocation0 + $0x8] sm:$0x1] }
  0x8d   :  { %56 = vst [vmem:[%s126_s1] sm:$0x1] %v53_v15 }
  0x8e   :  { %70 = vst [vmem:[%s126_s1 + $0x1] sm:$0x1] %v58_v16 }

// kernel: tile.18
= control target key start
LH: loop header
LB: loop body
LE: loop exit
PB: predicated region body
PF: predicated region fallthrough
CT: control target
= control target key end

     0   :  { %s22_s0 = inlined_call_operand.vmem [shape: f32[32], index: 0, kind: input, shape index: {}]   ;;  %s23_s1 = inlined_call_operand.vmem [shape: f32[6,32], index: 1, kind: output, shape index: {}]  }
   0x1   :  { %v4_v0 = vld [vmem:[%s22_s0] ss:$0 sm:$0xff] }
   0x2   :  { %5 = vst [vmem:[%s23_s1] sm:$0xff] %v4_v0 }

// kernel: tile.19
= control target key start
LH: loop header
LB: loop body
LE: loop exit
PB: predicated region body
PF: predicated region fallthrough
CT: control target
= control target key end

     0   :  { %s44_s8 = smov 96   ;;  %s19_s9 = smov 3  ;;  %vm4_vm0 = vcmask 261120   ;;  %vm10_vm1 = vcmask 1048320   ;;  %vm16_vm2 = vcmask 785920   ;;  %vm23_vm3 = vcmask 523520   ;;  %s75_s0 = inlined_call_operand.vmem [shape: f32[6,32], index: 0, kind: input, shape index: {}]   ;;  %s76_s1 = inlined_call_operand.vmem [shape: f32[1,192], index: 1, kind: output, shape index: {}]  }
   0x1   :  { %v37_v0 = vld [vmem:[%s75_s0 + $0x3] sm:$0x1]   ;;  %v39_v1 = vld [vmem:[%s75_s0 + $0x1] ss:$4 sm:%s19_s9]   ;;  %s45_s12 = smov 32   ;;  %s46_s15 = smov 64  }
   0x2   :  { %8 = vrot.lane.b32.xlu0 %v37_v0, %s44_s8  ;;  %21 = vrot.lane.b32.xlu1 %v39_v1, %s45_s12  ;;  %v38_v2 = vld [vmem:[%s75_s0 + $0x2] sm:$0x1]   ;;  %s2_s16 = smov 3 }
   0x3   :  { %v3_v3 = vld [vmem:[%s75_s0] ss:$4 sm:%s2_s16]  }
   0x4   :  { %5 = vst.msk [vmem:[#allocation0] ss:$8 sm:$0x3] %vm4_vm0, %v3_v3  }
   0xa   :  { %14 = vrot.lane.b32.xlu0 %v38_v2, %s46_s15 }
  0x74   :  { %v9_v4 = vpop.permute.xlu0 %8   ;;  %v22_v5 = vpop.permute.xlu1 %21  }
  0x75   :  { %11 = vst.msk [vmem:[#allocation0] sm:$0x1] %vm10_vm1, %v9_v4  }
  0x7c   :  { %v15_v6 = vpop.permute.xlu0 %14  }
  0x7d   :  { %17 = vst.msk [vmem:[#allocation0] sm:$0x1] %vm16_vm2, %v15_v6  }
  0x7e   :  { %24 = vst.msk [vmem:[#allocation0] ss:$8 sm:$0x3] %vm23_vm3, %v22_v5  }
  0x85   :  { %v27_v7 = vld [vmem:[#allocation0] sm:$0x1]  ;;  %v32_v8 = vld [vmem:[#allocation0 + $0x8] sm:$0x1] }
  0x86   :  { %30 = vst [vmem:[%s76_s1] sm:$0x1] %v27_v7 }
  0x87   :  { %40 = vst [vmem:[%s76_s1 + $0x1] sm:$0x1] %v32_v8 }

// kernel: convnet_forward.1
= control target key start
LH: loop header
LB: loop body
LE: loop exit
PB: predicated region body
PF: predicated region fallthrough
CT: control target
= control target key end

     0   :  { %12 = vsyncpa [#allocation5], 0  ;;  %s3410_s0 = inlined_call_operand.vmem [shape: f32[2,5,20,16], index: 0, kind: input, shape index: {}]   ;;  %s3411_s1 = inlined_call_operand.vmem [shape: f32[5,16,192], index: 1, kind: input, shape index: {}]   ;;  %s3412_s2 = inlined_call_operand.vmem [shape: f32[1,192], index: 2, kind: input, shape index: {}]   ;;  %s3413_s3 = inlined_call_operand.vmem [shape: f32[5,160,192], index: 3, kind: input, shape index: {}]   ;;  %s3414_s4 = inlined_call_operand.vmem [shape: f32[1,192], index: 4, kind: input, shape index: {}]   ;;  %s3415_s5 = inlined_call_operand.vmem [shape: f32[5,96,7], index: 5, kind: input, shape index: {}]   ;;  %s3416_s6 = inlined_call_operand.vmem [shape: f32[1,7], index: 6, kind: input, shape index: {}]   ;;  %s3417_s7 = inlined_call_operand.hbm [shape: f32[2,1,7], index: 7, kind: output, shape index: {}]  }
   0x1   :  { %14 = vsyncpa [#allocation5 + $0x1], 0  ;;  %s2288_s24 = smov 0   ;;  %s2290_s25 = smov 0  }
   0x2   :  { %s2292_s26 = smov 0   ;;  %s2294_s27 = smov 0  }
   0x3 LB: > { %s2309_s28 = sadd.s32 4294967295, %s2239_s27   ;;  %s1832_s29 = sadd.s32 4294967294, %s2239_s27   ;;  %s2239_s27 = sphi %s2294_s27, %s3423_s27   ;;  %s2235_s26 = sphi %s2292_s26, %s3422_s26   ;;  %s2231_s25 = sphi %s2290_s25, %s3421_s25   ;;  %s2227_s24 = sphi %s2288_s24, %s3420_s24  }
   0x4   : > { %s2313_s30 = sadd.s32 1, %s2239_s27   ;;  %s179_s8 = sadd.s32 1, %s2235_s26 }
   0x5   : > { %s176_s9 = ssub.s32 %s2239_s27, %s2313_s30  ;;  %p189_p0 = scmp.ne.s32.totalorder %s2235_s26, %s2231_s25 }
   0x6   : > { %p177_p1 = scmp.eq.s32.totalorder %s176_s9, 0  ;;  %p190_p2 = scmp.eq.s32.totalorder %s2309_s28, 1 }
   0x7   : > { %p195_p3 = scmp.ne.s32.totalorder %s2231_s25, %s2227_s24  ;;  %p196_p4 = scmp.eq.s32.totalorder %s1832_s29, 1 }
   0x8   : > { %s2324_s10 = scalar_select %p177_p1, %s2235_s26, %s179_s8  }
   0x9   : > { %p2326_p5 = por %p190_p2, %p189_p0  ;;  %p2330_p6 = por %p196_p4, %p195_p3 }
   0xa   : > { %p1835_p7 = scmp.ge.s32.totalorder %s2239_s27, 1  ;;  %p240_p8 = scmp.lt.s32.totalorder %s2239_s27, 3 }
   0xc   : > { %p241_p9 = pnand %p1835_p7, %p240_p8 }
   0xd   : > { %p271_p10 = scmp.lt.s32.totalorder (!%p241_p9), %s2309_s28, 1  ;;  %s2242_s19 = smov (!%p241_p9), 80  }
   0xe   : > { %244 = sbr.rel (%p241_p9) target bundleno = 1209 (0x4b9), region = 48  ;;  %s2243_s20 = smov (!%p241_p9), 96  }
   0xf   : > { %s2244_s21 = smov (!%p241_p9), 64   ;;  %s269_s17 = sand.u32 (!%p241_p9), 1, %s2231_s25  }
  0x10   : > { %s1765_s29 = scalar_lea.sflag (!%p241_p9), [#allocation5], %s269_s17  ;;  %s2197_s13 = scalar_lea.hbm (!%p241_p9), %s3417_s7, 2 }
  0x13   : > { %v1842_v0 = vld [vmem:[%s3411_s1 + $0x30] sm:$0xff]  ;;  %v1843_v1 = vld [vmem:[%s3411_s1 + $0x38] sm:$0xff]  ;;  %v1840_v4 = vld [vmem:[%s3411_s1 + $0x20] sm:$0xff]  ;;  %s272_s15 = scalar_select %p271_p10, %s2309_s28, 1  ;;  %vm292_vm0 = vcmask 130048   ;;  %vm647_vm1 = vcmask 1045504  }
  0x14   : > { %v281_v2 = vld [vmem:[%s3411_s1 + $0x10] sm:$0xff]  ;;  %316 = vmatpush.msra.mxu0 %v1842_v0  ;;  %342 = vmatpush.msra.mxu1 %v1843_v1  ;;  %v282_v3 = vld [vmem:[%s3411_s1 + $0x18] sm:$0xff]  ;;  %v1841_v5 = vld [vmem:[%s3411_s1 + $0x28] sm:$0xff]  ;;  %vm745_vm2 = vcmask 260096   ;;  %vm775_vm3 = vcmask 1044480   ;;  %vm732_vm4 = vcmask 261120  }
  0x15   : > { %377 = vmatpush.msra.mxu2 %v281_v2  ;;  %403 = vmatpush.msra.mxu3 %v282_v3  ;;  %v279_v6 = vld [vmem:[%s3411_s1] sm:$0xff]  ;;  %v280_v7 = vld [vmem:[%s3411_s1 + $0x8] sm:$0xff]  ;;  %v1861_v8 = vld [vmem:[%s3411_s1 + $0x50] sm:$0xff]  ;;  %s2130_s22 = smul.u32 120, %s272_s15  ;;  %s2241_s15 = smov 112   ;;  %vm735_vm5 = vcmask 392192  }
  0x16   : > { %317 = vmatpush.msra.mxu0 %v1840_v4  ;;  %343 = vmatpush.msra.mxu1 %v1841_v5  ;;  %v1862_v9 = vld [vmem:[%s3411_s1 + $0x58] sm:$0xff]  ;;  %v1874_v10 = vld [vmem:[%s3411_s1 + $0x70] sm:$0xff]  ;;  %v1859_v11 = vld [vmem:[%s3411_s1 + $0x40] sm:$0xff]  ;;  %vm738_vm6 = vcmask 523264   ;;  %vm741_vm7 = vcmask 654336   ;;  %vm757_vm8 = vcmask 1043456  }
  0x17   : > { %378 = vmatpush.msra.mxu2 %v279_v6  ;;  %404 = vmatpush.msra.mxu3 %v280_v7  ;;  %v1875_v12 = vld [vmem:[%s3411_s1 + $0x78] sm:$0xff]  ;;  %v1860_v13 = vld [vmem:[%s3411_s1 + $0x48] sm:$0xff]  ;;  %s2383_s18 = scalar_lea.vmem %s3410_s0, %s2130_s22  ;;  %v1872_v14 = vld [vmem:[%s3411_s1 + $0x60] sm:$0xff]  ;;  %s2245_s22 = smov 48   ;;  %vm754_vm9 = vcmask 1045761   ;;  %vm1535_vm10 = vcmask 1042432  }
  0x18   : > { %447 = vmatpush.msrb.mxu0 %v1861_v8  ;;  %473 = vmatpush.msrb.mxu1 %v1862_v9  ;;  %v1837_v15 = vld [vmem:[%s2383_s18 + $0x18] sm:$0xff]  ;;  %v276_v16 = vld [vmem:[%s2383_s18] sm:$0xff]  ;;  %v1873_v17 = vld [vmem:[%s3411_s1 + $0x68] sm:$0xff]  ;;  %vm1589_vm11 = vcmask 785408   ;;  %vm1762_vm12 = vcmask 49152  }
  0x19   : > { %523 = vmatpush.msrb.mxu2 %v1874_v10  ;;  %549 = vmatpush.msrb.mxu3 %v1875_v12  ;;  %v1887_v18 = vld [vmem:[%s3411_s1 + $0x90] sm:$0xff]  ;;  %v1838_v19 = vld [vmem:[%s2383_s18 + $0x20] sm:$0xff]  ;;  %v277_v20 = vld [vmem:[%s2383_s18 + $0x8] sm:$0xff] }
  0x1a   : > { %448 = vmatpush.msrb.mxu0 %v1859_v11  ;;  %474 = vmatpush.msrb.mxu1 %v1860_v13  ;;  %v1885_v21 = vld [vmem:[%s3411_s1 + $0x80] sm:$0xff]  ;;  %v1888_v22 = vld [vmem:[%s3411_s1 + $0x98] sm:$0xff]  ;;  %v1886_v23 = vld [vmem:[%s3411_s1 + $0x88] sm:$0xff] }
  0x1b   : > { %1844 = vmatmul.msk.f32.vlgmr.msra.gmra.mxu0 %vm292_vm0, %v1837_v15  ;;  %1847 = vmatmul.msk.f32.vlgmr.msra.gmra.mxu1 %vm292_vm0, %v1837_v15  ;;  %v1839_v24 = vld [vmem:[%s2383_s18 + $0x28] sm:$0xf]  ;;  %v278_v25 = vld [vmem:[%s2383_s18 + $0x10] sm:$0xf]  ;;  %v1857_v28 = vld [vmem:[%s2383_s18 + $0x38] sm:$0xff] }
  0x1c   : > { %1850 = vmatmul.msk.f32.vlgmr.msra.gmra.mxu2 %vm292_vm0, %v276_v16  ;;  %1853 = vmatmul.msk.f32.vlgmr.msra.gmra.mxu3 %vm292_vm0, %v276_v16  ;;  %v1856_v26 = vld [vmem:[%s2383_s18 + $0x30] sm:$0xff]  ;;  %v1869_v27 = vld [vmem:[%s2383_s18 + $0x48] sm:$0xff]  ;;  %v1858_v30 = vld [vmem:[%s2383_s18 + $0x40] sm:$0xf] }
  0x1d   : > { %524 = vmatpush.msrb.mxu2 %v1872_v14  ;;  %550 = vmatpush.msrb.mxu3 %v1873_v17  ;;  %v1870_v29 = vld [vmem:[%s2383_s18 + $0x50] sm:$0xff]  ;;  %v1871_v31 = vld [vmem:[%s2383_s18 + $0x58] sm:$0xf]  ;;  %v1882_v32 = vld [vmem:[%s2383_s18 + $0x60] sm:$0xff] }
  0x1e   : > { %599 = vmatpush.msra.mxu0 %v1887_v18  ;;  %625 = vmatpush.msra.mxu1 %v1888_v22  ;;  %v1883_v33 = vld [vmem:[%s2383_s18 + $0x68] sm:$0xff]  ;;  %v1884_v34 = vld [vmem:[%s2383_s18 + $0x70] sm:$0xf]  ;;  %s2247_s18 = smov 32  }
  0x20   : > { %600 = vmatpush.msra.mxu0 %v1885_v21  ;;  %626 = vmatpush.msra.mxu1 %v1886_v23  ;;  %v662_v21 = vld [vmem:[%s3412_s2] sm:$0x3] }
  0x23   : > { %1845 = vmatmul.msk.f32.gmra.mxu0 %vm292_vm0, %v1838_v19  ;;  %1848 = vmatmul.msk.f32.gmra.mxu1 %vm292_vm0, %v1838_v19 }
  0x24   : > { %1851 = vmatmul.msk.f32.gmra.mxu2 %vm292_vm0, %v277_v20  ;;  %1854 = vmatmul.msk.f32.gmra.mxu3 %vm292_vm0, %v277_v20 }
  0x2b   : > { %1846 = vmatmul.msk.f32.gmra.mxu0 %vm292_vm0, %v1839_v24  ;;  %1849 = vmatmul.msk.f32.gmra.mxu1 %vm292_vm0, %v1839_v24 }
  0x2c   : > { %1852 = vmatmul.msk.f32.gmra.mxu2 %vm292_vm0, %v278_v25  ;;  %1855 = vmatmul.msk.f32.gmra.mxu3 %vm292_vm0, %v278_v25 }
  0x33   : > { %1863 = vmatmul.msk.f32.vlgmr.msrb.gmra.mxu0 %vm292_vm0, %v1856_v26  ;;  %1866 = vmatmul.msk.f32.vlgmr.msrb.gmra.mxu1 %vm292_vm0, %v1856_v26 }
  0x34   : > { %1876 = vmatmul.msk.f32.vlgmr.msrb.gmra.mxu2 %vm292_vm0, %v1869_v27  ;;  %1879 = vmatmul.msk.f32.vlgmr.msrb.gmra.mxu3 %vm292_vm0, %v1869_v27 }
  0x3b   : > { %1864 = vmatmul.msk.f32.gmra.mxu0 %vm292_vm0, %v1857_v28  ;;  %1867 = vmatmul.msk.f32.gmra.mxu1 %vm292_vm0, %v1857_v28 }
  0x3c   : > { %1877 = vmatmul.msk.f32.gmra.mxu2 %vm292_vm0, %v1870_v29  ;;  %1880 = vmatmul.msk.f32.gmra.mxu3 %vm292_vm0, %v1870_v29 }
  0x43   : > { %1865 = vmatmul.msk.f32.gmra.mxu0 %vm292_vm0, %v1858_v30  ;;  %1868 = vmatmul.msk.f32.gmra.mxu1 %vm292_vm0, %v1858_v30  ;;  %v665_v30 = vperm.slane %v662_v21, 1 }
  0x44   : > { %1878 = vmatmul.msk.f32.gmra.mxu2 %vm292_vm0, %v1871_v31  ;;  %1881 = vmatmul.msk.f32.gmra.mxu3 %vm292_vm0, %v1871_v31  ;;  %v664_v31 = vperm.slane %v662_v21, 0 }
  0x4b   : > { %1889 = vmatmul.msk.f32.vlgmr.msra.gmra.mxu0 %vm292_vm0, %v1882_v32  ;;  %1892 = vmatmul.msk.f32.vlgmr.msra.gmra.mxu1 %vm292_vm0, %v1882_v32 }
  0x53   : > { %1890 = vmatmul.msk.f32.gmra.mxu0 %vm292_vm0, %v1883_v33  ;;  %1893 = vmatmul.msk.f32.gmra.mxu1 %vm292_vm0, %v1883_v33 }
  0x5b   : > { %1891 = vmatmul.msk.f32.gmra.mxu0 %vm292_vm0, %v1884_v34  ;;  %1894 = vmatmul.msk.f32.gmra.mxu1 %vm292_vm0, %v1884_v34 }
  0x98   : > { %v319_v35 = vpop.f32.mrf.mxu0  ;;  %v345_v36 = vpop.f32.mrf.mxu1 }
  0x9f   : > { %v380_v39 = vpop.f32.mrf.mxu2  ;;  %v406_v40 = vpop.f32.mrf.mxu3 }
  0xa0   : > { %v322_v37 = vpop.f32.mrf.mxu0  ;;  %v348_v38 = vpop.f32.mrf.mxu1  ;;  %v381_v9 = vadd.f32 %v380_v39, %v319_v35  ;;  %v407_v10 = vadd.f32 %v406_v40, %v345_v36 }
  0xa7   : > { %v383_v43 = vpop.f32.mrf.mxu2  ;;  %v409_v44 = vpop.f32.mrf.mxu3 }
  0xa8   : > { %v325_v41 = vpop.f32.mrf.mxu0  ;;  %v351_v42 = vpop.f32.mrf.mxu1  ;;  %v384_v61 = vadd.f32 %v383_v43, %v322_v37  ;;  %v410_v62 = vadd.f32 %v409_v44, %v348_v38 }
  0xaf   : > { %v386_v47 = vpop.f32.mrf.mxu2  ;;  %v412_v48 = vpop.f32.mrf.mxu3 }
  0xb0   : > { %v450_v45 = vpop.f32.mrf.mxu0  ;;  %v476_v46 = vpop.f32.mrf.mxu1  ;;  %v387_v63 = vadd.f32 %v386_v47, %v325_v41  ;;  %v413_v0 = vadd.f32 %v412_v48, %v351_v42 }
  0xb1   : > { %v485_v15 = vadd.f32 %v450_v45, %v381_v9  ;;  %v486_v16 = vadd.f32 %v476_v46, %v407_v10 }
  0xb7   : > { %v526_v51 = vpop.f32.mrf.mxu2  ;;  %v552_v52 = vpop.f32.mrf.mxu3 }
  0xb8   : > { %v453_v49 = vpop.f32.mrf.mxu0  ;;  %v479_v50 = vpop.f32.mrf.mxu1  ;;  %v561_v22 = vadd.f32 %v526_v51, %v485_v15  ;;  %v562_v23 = vadd.f32 %v552_v52, %v486_v16  ;;  %v1912_v15 = vld [vmem:[%s3413_s3 + $0x1c8] sm:$0xff] }
  0xb9   : > { %v487_v1 = vadd.f32 %v453_v49, %v384_v61  ;;  %v488_v2 = vadd.f32 %v479_v50, %v410_v62  ;;  %v1922_v61 = vld [vmem:[%s3413_s3 + $0x218] sm:$0xff]  ;;  %v1927_v62 = vld [vmem:[%s3413_s3 + $0x240] sm:$0xff]  ;;  %v807_v16 = vld [vmem:[%s3413_s3 + $0xe8] sm:$0xff] }
  0xbf   : > { %v529_v57 = vpop.f32.mrf.mxu2  ;;  %v555_v58 = vpop.f32.mrf.mxu3 }
  0xc0   : > { %v456_v53 = vpop.f32.mrf.mxu0  ;;  %v482_v54 = vpop.f32.mrf.mxu1  ;;  %v563_v5 = vadd.f32 %v529_v57, %v487_v1  ;;  %v564_v6 = vadd.f32 %v555_v58, %v488_v2  ;;  %v1926_v57 = vld [vmem:[%s3413_s3 + $0x238] sm:$0xff]  ;;  %v2246_v58 = vmov 0.0   ;;  %v1932_v2 = vld [vmem:[%s3413_s3 + $0x268] sm:$0xff] }
  0xc1   : > { %v489_v7 = vadd.f32 %v456_v53, %v387_v63  ;;  %v490_v8 = vadd.f32 %v482_v54, %v413_v0  ;;  %746 = vst.msk [vmem:[#allocation2 + $0x8] sm:$0x7f] %vm745_vm2, %v2246_v58  ;;  %920 = vmatpush.msrb.mxu0 %v1926_v57  ;;  %v1934_v63 = vld [vmem:[%s3413_s3 + $0x278] sm:$0xff]  ;;  %v1920_v0 = vld [vmem:[%s3413_s3 + $0x208] sm:$0xff] }
  0xc2   : > { %748 = vst.msk [vmem:[#allocation3 + $0x8] sm:$0x7f] %vm745_vm2, %v2246_v58  ;;  %v791_v57 = vld [vmem:[%s3413_s3 + $0x68] sm:$0xff] }
  0xc3   : > { %744 = vst [vmem:[#allocation2] sm:$0x7f] %v2246_v58 }
  0xc4   : > { %747 = vst [vmem:[#allocation3] sm:$0x7f] %v2246_v58  ;;  %v1917_v58 = vld [vmem:[%s3413_s3 + $0x1f0] sm:$0xff] }
  0xc7   : > { %v532_v3 = vpop.f32.mrf.mxu2  ;;  %v558_v4 = vpop.f32.mrf.mxu3 }
  0xc8   : > { %v602_v55 = vpop.f32.mrf.mxu0  ;;  %v628_v56 = vpop.f32.mrf.mxu1  ;;  %v565_v11 = vadd.f32 %v532_v3, %v489_v7  ;;  %v566_v12 = vadd.f32 %v558_v4, %v490_v8  ;;  %v1918_v3 = vld [vmem:[%s3413_s3 + $0x1f8] sm:$0xff]  ;;  %v2498_v4 = vld [vmem:[#allocation2 + $0x8] sm:$0x3e] }
  0xc9   : > { %v637_v28 = vadd.f32 %v602_v55, %v561_v22  ;;  %v638_v29 = vadd.f32 %v628_v56, %v562_v23  ;;  %v1933_v55 = vld [vmem:[%s3413_s3 + $0x270] sm:$0xff]  ;;  %v1931_v56 = vld [vmem:[%s3413_s3 + $0x260] sm:$0xff]  ;;  %v823_v7 = vrot.slane %v2498_v4, 4  ;;  %v1916_v8 = vld [vmem:[%s3413_s3 + $0x1e8] sm:$0xff] }
  0xca   : > { %909 = vmatpush.msra.mxu3 %v1933_v55  ;;  %v804_v55 = vld [vmem:[%s3413_s3 + $0xd0] sm:$0xff] }
  0xcc   : > { %910 = vmatpush.msra.mxu3 %v1931_v56  ;;  %v1900_v56 = vld [vmem:[%s3413_s3 + $0x168] sm:$0xff] }
  0xd0   : > { %v605_v59 = vpop.f32.mrf.mxu0  ;;  %v631_v60 = vpop.f32.mrf.mxu1 }
  0xd1   : > { %v639_v13 = vadd.f32 %v605_v59, %v563_v5  ;;  %v640_v14 = vadd.f32 %v631_v60, %v564_v6  ;;  %v1929_v59 = vld [vmem:[%s3413_s3 + $0x250] sm:$0xff]  ;;  %v1924_v60 = vld [vmem:[%s3413_s3 + $0x228] sm:$0xff]  ;;  %v1930_v5 = vld [vmem:[%s3413_s3 + $0x258] sm:$0xff] }
  0xd2   : > { %921 = vmatpush.msrb.mxu0 %v1924_v60  ;;  %911 = vmatpush.msra.mxu3 %v1929_v59  ;;  %v2503_v6 = vld [vmem:[#allocation3 + $0x8] sm:$0x1f]  ;;  %v802_v59 = vld [vmem:[%s3413_s3 + $0xc0] sm:$0xff] }
  0xd3   : > { %v648_v24 = vrot.slane %v639_v13, 2  ;;  %v651_v25 = vrot.slane %v640_v14, 2  ;;  %v1898_v60 = vld [vmem:[%s3413_s3 + $0x158] sm:$0xff] }
  0xd4   : > { %922 = vmatpush.msrb.mxu0 %v1922_v61  ;;  %912 = vmatpush.msra.mxu3 %v1927_v62  ;;  %v789_v61 = vld [vmem:[%s3413_s3 + $0x58] sm:$0xff]  ;;  %v1915_v62 = vld [vmem:[%s3413_s3 + $0x1e0] sm:$0xff] }
  0xd6   : > { %955 = vmatpush.msrb.mxu3 %v1934_v63  ;;  %923 = vmatpush.msrb.mxu0 %v1920_v0  ;;  %v800_v63 = vld [vmem:[%s3413_s3 + $0xb0] sm:$0xff]  ;;  %v1896_v0 = vld [vmem:[%s3413_s3 + $0x148] sm:$0xff] }
  0xd8   : > { %v608_v17 = vpop.f32.mrf.mxu0  ;;  %v634_v18 = vpop.f32.mrf.mxu1  ;;  %956 = vmatpush.msrb.mxu3 %v1932_v2  ;;  %924 = vmatpush.msrb.mxu0 %v1918_v3  ;;  %v1973_v2 = vld [vmem:[%s3413_s3 + $0x370] sm:$0xff] }
  0xd9   : > { %v641_v19 = vadd.f32 %v608_v17, %v565_v11  ;;  %v642_v20 = vadd.f32 %v634_v18, %v566_v12  ;;  %v1928_v11 = vld [vmem:[%s3413_s3 + $0x248] sm:$0xff]  ;;  %v827_v12 = vsel %vm775_vm3, %v2503_v6, %v823_v7  ;;  %v1910_v17 = vld [vmem:[%s3413_s3 + $0x1b8] sm:$0xff]  ;;  %v1913_v3 = vld [vmem:[%s3413_s3 + $0x1d0] sm:$0xff] }
  0xda   : > { %957 = vmatpush.msrb.mxu3 %v1930_v5  ;;  %925 = vmatpush.msrb.mxu0 %v1916_v8  ;;  %v785_v5 = vld [vmem:[%s3413_s3 + $0x38] sm:$0xff]  ;;  %v1971_v8 = vld [vmem:[%s3413_s3 + $0x360] sm:$0xff] }
  0xdb   : > { %v649_v26 = vrot.slane %v641_v19, 2  ;;  %v652_v27 = vrot.slane %v642_v20, 2  ;;  %1935 = vmatmul.msk.f32.vlgmr.msra.gmra.mxu3 %vm732_vm4, %v827_v12  ;;  %v805_v19 = vld [vmem:[%s3413_s3 + $0xd8] sm:$0xff]  ;;  %v803_v20 = vld [vmem:[%s3413_s3 + $0xc8] sm:$0xff] }
  0xdc   : > { %958 = vmatpush.msrb.mxu3 %v1928_v11  ;;  %v796_v11 = vld [vmem:[%s3413_s3 + $0x90] sm:$0xff] }
  0xdd   : > { %v653_v32 = vsel %vm647_vm1, %v651_v25, %v652_v27  ;;  %v650_v33 = vsel %vm647_vm1, %v648_v24, %v649_v26  ;;  %v660_v38 = vmax.f32 %v639_v13, %v649_v26  ;;  %v661_v39 = vmax.f32 %v640_v14, %v652_v27  ;;  %v1914_v13 = vld [vmem:[%s3413_s3 + $0x1d8] sm:$0xff] }
  0xde   : > { %v659_v34 = vmax.f32 %v638_v29, %v653_v32  ;;  %v658_v35 = vmax.f32 %v637_v28, %v650_v33  ;;  %v809_v14 = vld [vmem:[%s3413_s3 + $0xf8] sm:$0xff]  ;;  %926 = vmatpush.msrb.mxu0 %v1914_v13  ;;  %v1909_v13 = vld [vmem:[%s3413_s3 + $0x1b0] sm:$0xff] }
  0xdf   : > { %v671_v42 = vadd.f32 %v665_v30, %v661_v39  ;;  %v670_v43 = vadd.f32 %v664_v31, %v660_v38  ;;  %1017 = vmatpush.msra.mxu3 %v809_v14  ;;  %v801_v25 = vld [vmem:[%s3413_s3 + $0xb8] sm:$0xff] }
  0xe0   : > { %v669_v36 = vadd.f32 %v665_v30, %v659_v34  ;;  %v668_v37 = vadd.f32 %v664_v31, %v658_v35  ;;  %927 = vmatpush.msrb.mxu0 %v1912_v15  ;;  %v781_v14 = vld [vmem:[%s3413_s3 + $0x18] sm:$0xff]  ;;  %v794_v15 = vld [vmem:[%s3413_s3 + $0x80] sm:$0xff] }
  0xe1   : > { %v675_v44 = vmax.f32 %v671_v42, 0.0  ;;  %v674_v45 = vmax.f32 %v670_v43, 0.0  ;;  %1018 = vmatpush.msra.mxu3 %v807_v16  ;;  %v799_v42 = vld [vmem:[%s3413_s3 + $0xa8] sm:$0xff]  ;;  %v1906_v43 = vld [vmem:[%s3413_s3 + $0x198] sm:$0xff]  ;;  %v1967_v16 = vld [vmem:[%s3413_s3 + $0x340] sm:$0xff] }
  0xe2   : > { %v673_v40 = vmax.f32 %v669_v36, 0.0  ;;  %v672_v41 = vmax.f32 %v668_v37, 0.0  ;;  %928 = vmatpush.msrb.mxu0 %v1910_v17  ;;  %v1907_v17 = vld [vmem:[%s3413_s3 + $0x1a0] sm:$0xff] }
  0xe3   : > { %1019 = vmatpush.msra.mxu3 %v805_v19  ;;  %v792_v19 = vld [vmem:[%s3413_s3 + $0x70] sm:$0xff] }
  0xe4   : > { %688 = vrot.lane.b32.xlu1 %v673_v40, %s2241_s15  ;;  %678 = vrot.lane.b32.xlu0 %v672_v41, %s2241_s15 }
  0xe5   : > { %1020 = vmatpush.msra.mxu3 %v803_v20  ;;  %v1965_v20 = vld [vmem:[%s3413_s3 + $0x330] sm:$0xff] }
  0xe6   : > { %1936 = vmatmul.msk.f32.gmra.mxu3 %vm732_vm4, %v823_v7 }
  0xe7   : > { %1021 = vmatpush.msra.mxu3 %v801_v25  ;;  %v2015_v25 = vld [vmem:[%s3413_s3 + $0x4a0] sm:$0xff] }
  0xe9   : > { %1022 = vmatpush.msra.mxu3 %v799_v42 }
  0xec   : > { %690 = vrot.lane.b32.xlu1 %v675_v44, %s2241_s15  ;;  %680 = vrot.lane.b32.xlu0 %v674_v45, %s2241_s15 }
  0xee   : > { %1937 = vmatmul.msk.f32.vlgmr.msrb.gmra.mxu3 %vm732_vm4, %v827_v12  ;;  %v1969_v12 = vld [vmem:[%s3413_s3 + $0x350] sm:$0xff] }
  0xf6   : > { %1938 = vmatmul.msk.f32.gmra.mxu3 %vm732_vm4, %v823_v7  ;;  %v798_v7 = vld [vmem:[%s3413_s3 + $0xa0] sm:$0xff] }
 0x156   : > { %v679_v46 = vpop.permute.xlu0 %678  ;;  %v689_v49 = vpop.permute.xlu1 %688 }
 0x157   : > { %v694_v50 = vmax.f32 %v673_v40, %v689_v49  ;;  %v2457_v51 = vmax.f32 %v672_v41, %v679_v46  ;;  %v1908_v41 = vld [vmem:[%s3413_s3 + $0x1a8] sm:$0xff]  ;;  %v808_v49 = vld [vmem:[%s3413_s3 + $0xf0] sm:$0xff] }
 0x158   : > { %929 = vmatpush.msrb.mxu0 %v1908_v41  ;;  %v1904_v46 = vld [vmem:[%s3413_s3 + $0x188] sm:$0xff]  ;;  %971 = vmatpush.msrb.mxu1 %v808_v49  ;;  %v2007_v41 = vld [vmem:[%s3413_s3 + $0x460] sm:$0xff] }
 0x159   : > { %v2003_v49 = vld [vmem:[%s3413_s3 + $0x440] sm:$0xff] }
 0x15a   : > { %930 = vmatpush.msrb.mxu0 %v1906_v43  ;;  %v1895_v43 = vld [vmem:[%s3413_s3 + $0x140] sm:$0xff] }
 0x15c   : > { %931 = vmatpush.msrb.mxu0 %v1904_v46  ;;  %v2005_v46 = vld [vmem:[%s3413_s3 + $0x450] sm:$0xff] }
 0x15e   : > { %v681_v47 = vpop.permute.xlu0 %680  ;;  %v691_v52 = vpop.permute.xlu1 %690 }
 0x15f   : > { %v2451_v48 = vmax.f32 %v674_v45, %v681_v47  ;;  %v695_v53 = vmax.f32 %v675_v44, %v691_v52  ;;  %v797_v44 = vld [vmem:[%s3413_s3 + $0x98] sm:$0xff]  ;;  %v1925_v45 = vld [vmem:[%s3413_s3 + $0x230] sm:$0xff]  ;;  %v795_v47 = vld [vmem:[%s3413_s3 + $0x88] sm:$0xff] }
 0x160   : > { %874 = vmatpush.msra.mxu2 %v1925_v45  ;;  %1023 = vmatpush.msra.mxu3 %v797_v44  ;;  %v793_v52 = vld [vmem:[%s3413_s3 + $0x78] sm:$0xff]  ;;  %v780_v44 = vld [vmem:[%s3413_s3 + $0x10] sm:$0xff] }
 0x161   : > { %712 = vrot.lane.b32.xlu0 %v2451_v48, %s2242_s19  ;;  %706 = vrot.lane.b32.xlu1 %v2451_v48, %s2243_s20  ;;  %v1953_v45 = vld [vmem:[%s3413_s3 + $0x2d0] sm:$0xff] }
 0x162   : > { %700 = vrot.lane.b32.xlu2 %v2451_v48, %s2241_s15  ;;  %1024 = vmatpush.msra.mxu3 %v795_v47  ;;  %v778_v47 = vld [vmem:[%s3413_s3] sm:$0xff] }
 0x164   : > { %1025 = vmatpush.msra.mxu3 %v793_v52  ;;  %v2001_v52 = vld [vmem:[%s3413_s3 + $0x430] sm:$0xff] }
 0x166   : > { %1026 = vmatpush.msra.mxu3 %v791_v57  ;;  %v812_v57 = vld [vmem:[%s3413_s3 + $0x110] sm:$0xff] }
 0x168   : > { %1027 = vmatpush.msra.mxu3 %v789_v61  ;;  %v810_v61 = vld [vmem:[%s3413_s3 + $0x100] sm:$0xff] }
 0x169   : > { %704 = vrot.lane.b32.xlu0 %v2457_v51, %s2243_s20  ;;  %718 = vrot.lane.b32.xlu1 %v694_v50, %s2244_s21 }
 0x16a   : > { %698 = vrot.lane.b32.xlu2 %v2457_v51, %s2241_s15  ;;  %s1773_s15 = scalar_lea.hbm %s3417_s7, %s2309_s28 }
 0x16b   : > { %s1777_s23 = sshll.u32 %s1773_s15, 4  ;;  %s1778_s23 = int_to_ptr.hbm [resolvable:$true] %s1777_s23 }
 0x16c   : > { %s2191_s8 = sshra.s32 %s1778_s23, 4  ;;  %s2192_s8 = int_to_ptr.hbm [resolvable:$true] %s2191_s8 }
 0x16d   : > { %p2198_p0 = scmp.lt.s32.totalorder %s2192_s8, %s3417_s7 }
 0x171   : > { %724 = vrot.lane.b32.xlu0 %v694_v50, %s2245_s22  ;;  %726 = vrot.lane.b32.xlu1 %v695_v53, %s2245_s22  ;;  %v1921_v50 = vld [vmem:[%s3413_s3 + $0x210] sm:$0xff] }
 0x172   : > { %710 = vrot.lane.b32.xlu2 %v2457_v51, %s2242_s19  ;;  %s270_s19 = scalar_lea.vmem [#allocation4], %s269_s17 }
 0x173   : > { %s1775_s22 = sshll.u32 %s270_s19, 4  ;;  %s1776_s22 = int_to_ptr.vmem [resolvable:$true] %s1775_s22 }
 0x17a   : > { %720 = vrot.lane.b32.xlu2 %v695_v53, %s2244_s21  ;;  %v806_v53 = vld [vmem:[%s3413_s3 + $0xe0] sm:$0xff] }
 0x17b   : > { %972 = vmatpush.msrb.mxu1 %v806_v53  ;;  %v814_v53 = vld [vmem:[%s3413_s3 + $0x120] sm:$0xff] }
 0x17d   : > { %973 = vmatpush.msrb.mxu1 %v804_v55  ;;  %v1947_v55 = vld [vmem:[%s3413_s3 + $0x2a0] sm:$0xff] }
 0x17f   : > { %974 = vmatpush.msrb.mxu1 %v802_v59  ;;  %v1945_v59 = vld [vmem:[%s3413_s3 + $0x290] sm:$0xff] }
 0x181   : > { %975 = vmatpush.msrb.mxu1 %v800_v63  ;;  %v1977_v63 = vld [vmem:[%s3413_s3 + $0x390] sm:$0xff] }
 0x183   : > { %976 = vmatpush.msrb.mxu1 %v798_v7  ;;  %v1987_v7 = vld [vmem:[%s3413_s3 + $0x3c0] sm:$0xff] }
 0x185   : > { %977 = vmatpush.msrb.mxu1 %v796_v11 }
 0x187   : > { %978 = vmatpush.msrb.mxu1 %v794_v15 }
 0x189   : > { %979 = vmatpush.msrb.mxu1 %v792_v19 }
 0x1bc   : > { %v701_v54 = vpop.permute.xlu2 %700 }
 0x1bd   : > { %v731_v23 = vsel %vm292_vm0, %v2451_v48, %v701_v54  ;;  %v1923_v48 = vld [vmem:[%s3413_s3 + $0x220] sm:$0xff] }
 0x1be   : > { %875 = vmatpush.msra.mxu2 %v1923_v48  ;;  %v1919_v54 = vld [vmem:[%s3413_s3 + $0x200] sm:$0xff] }
 0x1bf   : > { %v1951_v48 = vld [vmem:[%s3413_s3 + $0x2c0] sm:$0xff] }
 0x1c0   : > { %876 = vmatpush.msra.mxu2 %v1921_v50  ;;  %v816_v50 = vld [vmem:[%s3413_s3 + $0x130] sm:$0xff] }
 0x1c2   : > { %877 = vmatpush.msra.mxu2 %v1919_v54  ;;  %v1981_v54 = vld [vmem:[%s3413_s3 + $0x3b0] sm:$0xff] }
 0x1c4   : > { %v699_v1 = vpop.permute.xlu2 %698  ;;  %878 = vmatpush.msra.mxu2 %v1917_v58  ;;  %v1979_v58 = vld [vmem:[%s3413_s3 + $0x3a0] sm:$0xff] }
 0x1c5   : > { %v730_v24 = vsel %vm292_vm0, %v2457_v51, %v699_v1  ;;  %v1902_v51 = vld [vmem:[%s3413_s3 + $0x178] sm:$0xff]  ;;  %v787_v1 = vld [vmem:[%s3413_s3 + $0x48] sm:$0xff] }
 0x1c6   : > { %932 = vmatpush.msrb.mxu0 %v1902_v51  ;;  %879 = vmatpush.msra.mxu2 %v1915_v62  ;;  %v1949_v51 = vld [vmem:[%s3413_s3 + $0x2b0] sm:$0xff]  ;;  %v1943_v62 = vld [vmem:[%s3413_s3 + $0x280] sm:$0xff] }
 0x1c7   : > { %1028 = vmatpush.msra.mxu3 %v787_v1  ;;  %v1975_v1 = vld [vmem:[%s3413_s3 + $0x380] sm:$0xff] }
 0x1c8   : > { %933 = vmatpush.msrb.mxu0 %v1900_v56  ;;  %880 = vmatpush.msra.mxu2 %v1913_v3  ;;  %v1999_v56 = vld [vmem:[%s3413_s3 + $0x420] sm:$0xff] }
 0x1c9   : > { %1029 = vmatpush.msra.mxu3 %v785_v5  ;;  %v1991_v3 = vld [vmem:[%s3413_s3 + $0x3e0] sm:$0xff]  ;;  %v1989_v5 = vld [vmem:[%s3413_s3 + $0x3d0] sm:$0xff] }
 0x1ca   : > { %934 = vmatpush.msrb.mxu0 %v1898_v60  ;;  %v1997_v60 = vld [vmem:[%s3413_s3 + $0x410] sm:$0xff] }
 0x1cc   : > { %v711_v18 = vpop.permute.xlu2 %710  ;;  %935 = vmatpush.msrb.mxu0 %v1896_v0  ;;  %v1995_v0 = vld [vmem:[%s3413_s3 + $0x400] sm:$0xff] }
 0x1ce   : > { %1123 = vmatpush.msra.mxu0 %v1973_v2  ;;  %v1993_v2 = vld [vmem:[%s3413_s3 + $0x3f0] sm:$0xff] }
 0x1d0   : > { %1124 = vmatpush.msra.mxu0 %v1971_v8 }
 0x1d2   : > { %1125 = vmatpush.msra.mxu0 %v1969_v12  ;;  %v817_v12 = vld [vmem:[%s3413_s3 + $0x138] sm:$0xff] }
 0x1d3   : > { %v713_v9 = vpop.permute.xlu0 %712  ;;  %v707_v10 = vpop.permute.xlu1 %706 }
 0x1d4   : > { %v734_v26 = vsel %vm732_vm4, %v731_v23, %v707_v10  ;;  %v721_v30 = vpop.permute.xlu2 %720  ;;  %v783_v10 = vld [vmem:[%s3413_s3 + $0x28] sm:$0xff]  ;;  %1126 = vmatpush.msra.mxu0 %v1967_v16  ;;  %v790_v23 = vld [vmem:[%s3413_s3 + $0x60] sm:$0xff] }
 0x1d5   : > { %v737_v28 = vsel %vm735_vm5, %v734_v26, %v713_v9  ;;  %v1911_v9 = vld [vmem:[%s3413_s3 + $0x1c0] sm:$0xff]  ;;  %1030 = vmatpush.msra.mxu3 %v783_v10  ;;  %980 = vmatpush.msrb.mxu1 %v790_v23  ;;  %v2021_v23 = vld [vmem:[%s3413_s3 + $0x4d0] sm:$0xff] }
 0x1d6   : > { %v740_v31 = vsel %vm738_vm6, %v737_v28, %v721_v30  ;;  %881 = vmatpush.msra.mxu2 %v1911_v9  ;;  %1127 = vmatpush.msra.mxu0 %v1965_v20  ;;  %v1903_v26 = vld [vmem:[%s3413_s3 + $0x180] sm:$0xff]  ;;  %v1961_v28 = vld [vmem:[%s3413_s3 + $0x310] sm:$0xff] }
 0x1d7   : > { %1031 = vmatpush.msra.mxu3 %v781_v14  ;;  %v1901_v30 = vld [vmem:[%s3413_s3 + $0x170] sm:$0xff]  ;;  %v2023_v20 = vld [vmem:[%s3413_s3 + $0x4e0] sm:$0xff] }
 0x1d8   : > { %882 = vmatpush.msra.mxu2 %v1909_v13  ;;  %v2025_v13 = vld [vmem:[%s3413_s3 + $0x4f0] sm:$0xff] }
 0x1da   : > { %883 = vmatpush.msra.mxu2 %v1907_v17  ;;  %v815_v17 = vld [vmem:[%s3413_s3 + $0x128] sm:$0xff] }
 0x1db   : > { %v705_v21 = vpop.permute.xlu0 %704  ;;  %v719_v22 = vpop.permute.xlu1 %718 }
 0x1dc   : > { %v733_v27 = vsel %vm732_vm4, %v730_v24, %v705_v21  ;;  %v2017_v21 = vld [vmem:[%s3413_s3 + $0x4b0] sm:$0xff]  ;;  %v1963_v24 = vld [vmem:[%s3413_s3 + $0x320] sm:$0xff] }
 0x1dd   : > { %v736_v29 = vsel %vm735_vm5, %v733_v27, %v711_v18  ;;  %v779_v18 = vld [vmem:[%s3413_s3 + $0x8] sm:$0xff]  ;;  %1128 = vmatpush.msra.mxu0 %v1963_v24  ;;  %v788_v27 = vld [vmem:[%s3413_s3 + $0x50] sm:$0xff] }
 0x1de   : > { %v739_v32 = vsel %vm738_vm6, %v736_v29, %v719_v22  ;;  %v1905_v22 = vld [vmem:[%s3413_s3 + $0x190] sm:$0xff]  ;;  %1032 = vmatpush.msra.mxu3 %v779_v18  ;;  %981 = vmatpush.msrb.mxu1 %v788_v27  ;;  %v1982_v18 = vld [vmem:[%s3413_s3 + $0x3b8] sm:$0xff]  ;;  %v811_v24 = vld [vmem:[%s3413_s3 + $0x108] sm:$0xff] }
 0x1df   : > { %884 = vmatpush.msra.mxu2 %v1905_v22  ;;  %v2013_v29 = vld [vmem:[%s3413_s3 + $0x490] sm:$0xff]  ;;  %1129 = vmatpush.msra.mxu0 %v1961_v28  ;;  %v1980_v22 = vld [vmem:[%s3413_s3 + $0x3a8] sm:$0xff]  ;;  %v2019_v27 = vld [vmem:[%s3413_s3 + $0x4c0] sm:$0xff] }
 0x1e0   : > { %1279 = vmatpush.msrb.mxu3 %v2017_v21  ;;  %v813_v21 = vld [vmem:[%s3413_s3 + $0x118] sm:$0xff]  ;;  %v1976_v28 = vld [vmem:[%s3413_s3 + $0x388] sm:$0xff] }
 0x1e1   : > { %885 = vmatpush.msra.mxu2 %v1903_v26  ;;  %v2069_v26 = vld [vmem:[%s3413_s3 + $0x630] sm:$0xff] }
 0x1e2   : > { %1280 = vmatpush.msrb.mxu3 %v2015_v25  ;;  %v1978_v25 = vld [vmem:[%s3413_s3 + $0x398] sm:$0xff] }
 0x1e3   : > { %v725_v33 = vpop.permute.xlu0 %724  ;;  %v727_v34 = vpop.permute.xlu1 %726  ;;  %886 = vmatpush.msra.mxu2 %v1901_v30  ;;  %v2863_v30 = vld [vmem:[#allocation3 + $0x8] sm:$0x3e] }
 0x1e4   : > { %v742_v35 = vsel %vm741_vm7, %v739_v32, %v725_v33  ;;  %v743_v36 = vsel %vm741_vm7, %v740_v31, %v727_v34  ;;  %v786_v31 = vld [vmem:[%s3413_s3 + $0x40] sm:$0xff]  ;;  %1281 = vmatpush.msrb.mxu3 %v2013_v29 }
 0x1e5   : > { %v750_v37 = vrot.slane %v742_v35, 7  ;;  %v758_v38 = vrot.slane %v742_v35, 4  ;;  %v759_v39 = vrot.slane %v743_v36, 4  ;;  %v1959_v32 = vld [vmem:[%s3413_s3 + $0x300] sm:$0xff]  ;;  %982 = vmatpush.msrb.mxu1 %v786_v31  ;;  %v784_v35 = vld [vmem:[%s3413_s3 + $0x30] sm:$0xff] }
 0x1e6   : > { %v2011_v33 = vld [vmem:[%s3413_s3 + $0x480] sm:$0xff]  ;;  %v1957_v36 = vld [vmem:[%s3413_s3 + $0x2f0] sm:$0xff]  ;;  %1130 = vmatpush.msra.mxu0 %v1959_v32  ;;  %v2869_v32 = vrot.slane %v2503_v6, 3 }
 0x1e7   : > { %751 = vrot.lane.b32.xlu2 %v750_v37, %s2247_s18  ;;  %v760_v40 = vsel %vm757_vm8, %v758_v38, %v759_v39  ;;  %v1899_v34 = vld [vmem:[%s3413_s3 + $0x160] sm:$0xff]  ;;  %v2009_v37 = vld [vmem:[%s3413_s3 + $0x470] sm:$0xff]  ;;  %1282 = vmatpush.msrb.mxu3 %v2011_v33  ;;  %v766_v33 = vld [vmem:[#allocation2 + $0x8] sm:$0x1f] }
 0x1e8   : > { %761 = vrot.lane.b32.xlu0 %v760_v40, %s2247_s18  ;;  %v1897_v38 = vld [vmem:[%s3413_s3 + $0x150] sm:$0xff]  ;;  %v782_v39 = vld [vmem:[%s3413_s3 + $0x20] sm:$0xff]  ;;  %887 = vmatpush.msra.mxu2 %v1899_v34 }
 0x1e9   : > { %983 = vmatpush.msrb.mxu1 %v784_v35  ;;  %v1955_v40 = vld [vmem:[%s3413_s3 + $0x2e0] sm:$0xff]  ;;  %1131 = vmatpush.msra.mxu0 %v1957_v36  ;;  %v2065_v34 = vld [vmem:[%s3413_s3 + $0x610] sm:$0xff]  ;;  %v1066_v36 = vrot.slane %v2498_v4, 1  ;;  %v1974_v4 = vld [vmem:[%s3413_s3 + $0x378] sm:$0xff] }
 0x1ea   : > { %1283 = vmatpush.msrb.mxu3 %v2009_v37  ;;  %888 = vmatpush.msra.mxu2 %v1897_v38  ;;  %v2067_v31 = vld [vmem:[%s3413_s3 + $0x620] sm:$0xff]  ;;  %v2878_v37 = vrot.slane %v2863_v30, 4 }
 0x1eb   : > { %984 = vmatpush.msrb.mxu1 %v782_v39  ;;  %1132 = vmatpush.msra.mxu0 %v1955_v40  ;;  %v2063_v6 = vld [vmem:[%s3413_s3 + $0x600] sm:$0xff]  ;;  %v2887_v39 = vsel %vm775_vm3, %v766_v33, %v2869_v32 }
 0x1ec   : > { %1284 = vmatpush.msrb.mxu3 %v2007_v41  ;;  %889 = vmatpush.msra.mxu2 %v1895_v43 }
 0x1ed   : > { %985 = vmatpush.msrb.mxu1 %v780_v44  ;;  %1133 = vmatpush.msra.mxu0 %v1953_v45  ;;  %v2901_v44 = vsel %vm775_vm3, %v1066_v36, %v2878_v37  ;;  %v2033_v36 = vld [vmem:[%s3413_s3 + $0x510] sm:$0xff] }
 0x1ee   : > { %1285 = vmatpush.msrb.mxu3 %v2005_v46  ;;  %1006 = vmatpush.msrb.mxu2 %v816_v50  ;;  %v1972_v46 = vld [vmem:[%s3413_s3 + $0x368] sm:$0xff]  ;;  %v1970_v50 = vld [vmem:[%s3413_s3 + $0x358] sm:$0xff] }
 0x1ef   : > { %986 = vmatpush.msrb.mxu1 %v778_v47  ;;  %1134 = vmatpush.msra.mxu0 %v1951_v48  ;;  %v2018_v47 = vld [vmem:[%s3413_s3 + $0x4b8] sm:$0xff] }
 0x1f0   : > { %1286 = vmatpush.msrb.mxu3 %v2003_v49  ;;  %1007 = vmatpush.msrb.mxu2 %v814_v53  ;;  %v2059_v49 = vld [vmem:[%s3413_s3 + $0x5e0] sm:$0xff]  ;;  %v1968_v53 = vld [vmem:[%s3413_s3 + $0x348] sm:$0xff] }
 0x1f1   : > { %1158 = vmatpush.msra.mxu1 %v1981_v54  ;;  %1135 = vmatpush.msra.mxu0 %v1949_v51  ;;  %v2016_v51 = vld [vmem:[%s3413_s3 + $0x4a8] sm:$0xff]  ;;  %v2014_v54 = vld [vmem:[%s3413_s3 + $0x498] sm:$0xff] }
 0x1f2   : > { %1287 = vmatpush.msrb.mxu3 %v2001_v52  ;;  %1008 = vmatpush.msrb.mxu2 %v812_v57  ;;  %v2057_v52 = vld [vmem:[%s3413_s3 + $0x5d0] sm:$0xff]  ;;  %v2012_v57 = vld [vmem:[%s3413_s3 + $0x488] sm:$0xff] }
 0x1f3   : > { %1159 = vmatpush.msra.mxu1 %v1979_v58  ;;  %1136 = vmatpush.msra.mxu0 %v1947_v55  ;;  %v2055_v55 = vld [vmem:[%s3413_s3 + $0x5c0] sm:$0xff]  ;;  %v2053_v58 = vld [vmem:[%s3413_s3 + $0x5b0] sm:$0xff] }
 0x1f4   : > { %1288 = vmatpush.msrb.mxu3 %v1999_v56  ;;  %1009 = vmatpush.msrb.mxu2 %v810_v61  ;;  %v1966_v56 = vld [vmem:[%s3413_s3 + $0x338] sm:$0xff] }
 0x1f5   : > { %1137 = vmatpush.msra.mxu0 %v1945_v59  ;;  %1160 = vmatpush.msra.mxu1 %v1977_v63  ;;  %v1964_v59 = vld [vmem:[%s3413_s3 + $0x328] sm:$0xff]  ;;  %v2010_v61 = vld [vmem:[%s3413_s3 + $0x478] sm:$0xff] }
 0x1f6   : > { %1289 = vmatpush.msrb.mxu3 %v1997_v60  ;;  %v1220_v60 = vld [vmem:[#allocation2 + $0x8] sm:$0x7c]  ;;  %v1962_v63 = vld [vmem:[%s3413_s3 + $0x318] sm:$0xff] }
 0x1f7   : > { %1138 = vmatpush.msra.mxu0 %v1943_v62  ;;  %1161 = vmatpush.msra.mxu1 %v1975_v1  ;;  %v2051_v62 = vld [vmem:[%s3413_s3 + $0x5a0] sm:$0xff]  ;;  %v2008_v1 = vld [vmem:[%s3413_s3 + $0x468] sm:$0xff] }
 0x1f8   : > { %1290 = vmatpush.msrb.mxu3 %v1995_v0  ;;  %v1376_v0 = vld [vmem:[#allocation3 + $0x8] sm:$0x7c] }
 0x1fa   : > { %1291 = vmatpush.msrb.mxu3 %v1993_v2  ;;  %v1222_v2 = vrot.slane %v2863_v30, 1  ;;  %v1994_v30 = vld [vmem:[%s3413_s3 + $0x3f8] sm:$0xff] }
 0x1fc   : > { %1292 = vmatpush.msrb.mxu3 %v1991_v3  ;;  %v2973_v3 = vrot.slane %v1220_v60, 5 }
 0x1fe   : > { %1293 = vmatpush.msrb.mxu3 %v1989_v5  ;;  %v2049_v5 = vld [vmem:[%s3413_s3 + $0x590] sm:$0xff] }
 0x200   : > { %1294 = vmatpush.msrb.mxu3 %v1987_v7  ;;  %v1960_v7 = vld [vmem:[%s3413_s3 + $0x308] sm:$0xff] }
 0x241   : > { %v752_v42 = vpop.permute.xlu2 %751 }
 0x242   : > { %755 = vst.msk [vmem:[#allocation2] sm:$0x3e] %vm754_vm9, %v752_v42  ;;  %v2061_v42 = vld [vmem:[%s3413_s3 + $0x5f0] sm:$0xff] }
 0x249   : > { %v818_v9 = vld [vmem:[#allocation2] sm:$0x3e] }
 0x24a   : > { %v822_v10 = vrot.slane %v818_v9, 4  ;;  %v765_v16 = vld [vmem:[#allocation2] sm:$0x1f]  ;;  %v1065_v40 = vrot.slane %v818_v9, 1  ;;  %v1378_v9 = vrot.slane %v1220_v60, 2  ;;  %v2040_v60 = vld [vmem:[%s3413_s3 + $0x548] sm:$0xff] }
 0x24b   : > { %v2880_v38 = vld [vmem:[#allocation2] sm:$0x7c] }
 0x24c   : > { %v2904_v45 = vrot.slane %v2880_v38, 5 }
 0x25a   : > { %v762_v8 = vpop.permute.xlu0 %761 }
 0x25b   : > { %764 = vst.msk [vmem:[#allocation3] sm:$0x3e] %vm754_vm9, %v762_v8  ;;  %v2006_v8 = vld [vmem:[%s3413_s3 + $0x458] sm:$0xff] }
 0x262   : > { %v767_v11 = vld [vmem:[#allocation3] sm:$0x1f] }
 0x263   : > { %v771_v14 = vrot.slane %v767_v11, 3  ;;  %v826_v15 = vsel %vm775_vm3, %v767_v11, %v822_v10  ;;  %v1063_v29 = vld [vmem:[#allocation3] sm:$0x3e]  ;;  %v2047_v11 = vld [vmem:[%s3413_s3 + $0x580] sm:$0xff] }
 0x264   : > { %890 = vmatmul.f32.vlgmr.msra.gmra.mxu2 %v826_v15  ;;  %936 = vmatmul.f32.vlgmr.msrb.gmra.mxu0 %v826_v15  ;;  %v2874_v35 = vrot.slane %v1063_v29, 4  ;;  %v1221_v41 = vrot.slane %v1063_v29, 1  ;;  %v2045_v15 = vld [vmem:[%s3413_s3 + $0x570] sm:$0xff]  ;;  %v1948_v29 = vld [vmem:[%s3413_s3 + $0x2a8] sm:$0xff] }
 0x265   : > { %v776_v19 = vsel %vm775_vm3, %v765_v16, %v771_v14  ;;  %1052 = vmatpush.msra.mxu2 %v817_v12  ;;  %1314 = vmatpush.msrb.mxu0 %v2025_v13  ;;  %v1958_v12 = vld [vmem:[%s3413_s3 + $0x2f8] sm:$0xff]  ;;  %v2995_v13 = vsel %vm775_vm3, %v1222_v2, %v2973_v3  ;;  %v1956_v16 = vld [vmem:[%s3413_s3 + $0x2e8] sm:$0xff]  ;;  %v1375_v33 = vld [vmem:[#allocation3] sm:$0x7c] }
 0x266   : > { %987 = vmatmul.f32.vlgmr.msrb.gmra.mxu1 %v776_v19  ;;  %1033 = vmatmul.f32.vlgmr.msra.gmra.mxu3 %v776_v19  ;;  %v2897_v43 = vsel %vm775_vm3, %v1065_v40, %v2874_v35  ;;  %v2917_v48 = vsel %vm775_vm3, %v1221_v41, %v2904_v45  ;;  %v2043_v19 = vld [vmem:[%s3413_s3 + $0x560] sm:$0xff]  ;;  %v2026_v40 = vld [vmem:[%s3413_s3 + $0x4f8] sm:$0xff] }
 0x267   : > { %1053 = vmatpush.msra.mxu2 %v815_v17  ;;  %1204 = vmatpush.msrb.mxu1 %v1982_v18  ;;  %v2002_v18 = vld [vmem:[%s3413_s3 + $0x438] sm:$0xff]  ;;  %v2031_v41 = vld [vmem:[%s3413_s3 + $0x500] sm:$0xff] }
 0x268   : > { %1315 = vmatpush.msrb.mxu0 %v2023_v20  ;;  %1470 = vmatpush.msra.mxu3 %v2069_v26  ;;  %v1954_v20 = vld [vmem:[%s3413_s3 + $0x2d8] sm:$0xff] }
 0x269   : > { %1054 = vmatpush.msra.mxu2 %v813_v21  ;;  %1205 = vmatpush.msrb.mxu1 %v1980_v22  ;;  %v2000_v21 = vld [vmem:[%s3413_s3 + $0x428] sm:$0xff]  ;;  %v2041_v22 = vld [vmem:[%s3413_s3 + $0x550] sm:$0xff]  ;;  %v1950_v26 = vld [vmem:[%s3413_s3 + $0x2b8] sm:$0xff] }
 0x26a   : > { %1316 = vmatpush.msrb.mxu0 %v2021_v23  ;;  %1471 = vmatpush.msra.mxu3 %v2067_v31  ;;  %v1952_v23 = vld [vmem:[%s3413_s3 + $0x2c8] sm:$0xff]  ;;  %v2035_v31 = vld [vmem:[%s3413_s3 + $0x520] sm:$0xff] }
 0x26b   : > { %1055 = vmatpush.msra.mxu2 %v811_v24  ;;  %1206 = vmatpush.msrb.mxu1 %v1978_v25  ;;  %v1998_v24 = vld [vmem:[%s3413_s3 + $0x418] sm:$0xff]  ;;  %v2039_v25 = vld [vmem:[%s3413_s3 + $0x540] sm:$0xff] }
 0x26c   : > { %893 = vmatmul.f32.gmra.mxu2 %v822_v10  ;;  %939 = vmatmul.f32.gmra.mxu0 %v822_v10  ;;  %v2985_v10 = vrot.slane %v1376_v0, 5  ;;  %v2032_v0 = vld [vmem:[%s3413_s3 + $0x508] sm:$0xff] }
 0x26d   : > { %1317 = vmatpush.msrb.mxu0 %v2019_v27  ;;  %1207 = vmatpush.msrb.mxu1 %v1976_v28  ;;  %v1996_v27 = vld [vmem:[%s3413_s3 + $0x408] sm:$0xff]  ;;  %v2037_v28 = vld [vmem:[%s3413_s3 + $0x530] sm:$0xff] }
 0x26e   : > { %990 = vmatmul.f32.gmra.mxu1 %v771_v14  ;;  %1036 = vmatmul.f32.gmra.mxu3 %v771_v14  ;;  %v2004_v14 = vld [vmem:[%s3413_s3 + $0x448] sm:$0xff]  ;;  %v3010_v17 = vsel %vm775_vm3, %v1378_v9, %v2985_v10 }
 0x26f   : > { %1472 = vmatpush.msra.mxu3 %v2065_v34  ;;  %v1992_v34 = vld [vmem:[%s3413_s3 + $0x3e8] sm:$0xff] }
 0x271   : > { %1473 = vmatpush.msra.mxu3 %v2063_v6  ;;  %v1944_v6 = vld [vmem:[%s3413_s3 + $0x288] sm:$0xff] }
 0x274   : > { %1939 = vmatmul.msk.f32.vlgmr.msrb.gmra.mxu2 %vm732_vm4, %v2887_v39  ;;  %1139 = vmatmul.f32.vlgmr.msra.gmra.mxu0 %v2897_v43 }
 0x275   : > { %1169 = vmatpush.msrb.mxu2 %v1974_v4  ;;  %1435 = vmatpush.msra.mxu0 %v2061_v42  ;;  %v1377_v4 = vrot.slane %v2880_v38, 2  ;;  %v1988_v42 = vld [vmem:[%s3413_s3 + $0x3c8] sm:$0xff]  ;;  %v2022_v38 = vld [vmem:[%s3413_s3 + $0x4d8] sm:$0xff] }
 0x276   : > { %1983 = vmatmul.msk.f32.vlgmr.msra.gmra.mxu1 %vm732_vm4, %v2901_v44  ;;  %1295 = vmatmul.f32.vlgmr.msrb.gmra.mxu3 %v2917_v48 }
 0x277   : > { %1170 = vmatpush.msrb.mxu2 %v1972_v46  ;;  %1325 = vmatpush.msra.mxu1 %v2018_v47  ;;  %v2070_v47 = vld [vmem:[%s3413_s3 + $0x638] sm:$0xff] }
 0x278   : > { %1436 = vmatpush.msra.mxu0 %v2059_v49  ;;  %v2020_v49 = vld [vmem:[%s3413_s3 + $0x4c8] sm:$0xff] }
 0x279   : > { %1171 = vmatpush.msrb.mxu2 %v1970_v50  ;;  %1326 = vmatpush.msra.mxu1 %v2016_v51  ;;  %v2062_v50 = vld [vmem:[%s3413_s3 + $0x5f8] sm:$0xff] }
 0x27a   : > { %1437 = vmatpush.msra.mxu0 %v2057_v52  ;;  %v2066_v51 = vld [vmem:[%s3413_s3 + $0x618] sm:$0xff]  ;;  %v2064_v52 = vld [vmem:[%s3413_s3 + $0x608] sm:$0xff] }
 0x27b   : > { %1172 = vmatpush.msrb.mxu2 %v1968_v53  ;;  %1327 = vmatpush.msra.mxu1 %v2014_v54  ;;  %v2058_v53 = vld [vmem:[%s3413_s3 + $0x5d8] sm:$0xff]  ;;  %v2056_v54 = vld [vmem:[%s3413_s3 + $0x5c8] sm:$0xff] }
 0x27c   : > { %1438 = vmatpush.msra.mxu0 %v2055_v55  ;;  %1940 = vmatmul.msk.f32.gmra.mxu2 %vm732_vm4, %v2869_v32  ;;  %v2054_v55 = vld [vmem:[%s3413_s3 + $0x5b8] sm:$0xff] }
 0x27d   : > { %1142 = vmatmul.f32.gmra.mxu0 %v2874_v35  ;;  %1173 = vmatpush.msrb.mxu2 %v1966_v56  ;;  %v2048_v56 = vld [vmem:[%s3413_s3 + $0x588] sm:$0xff] }
 0x27e   : > { %1328 = vmatpush.msra.mxu1 %v2012_v57  ;;  %1439 = vmatpush.msra.mxu0 %v2053_v58  ;;  %v2046_v57 = vld [vmem:[%s3413_s3 + $0x578] sm:$0xff]  ;;  %v2044_v58 = vld [vmem:[%s3413_s3 + $0x568] sm:$0xff] }
 0x27f   : > { %1984 = vmatmul.msk.f32.gmra.mxu1 %vm732_vm4, %v2878_v37  ;;  %1174 = vmatpush.msrb.mxu2 %v1964_v59  ;;  %v2042_v59 = vld [vmem:[%s3413_s3 + $0x558] sm:$0xff] }
 0x280   : > { %1298 = vmatmul.f32.gmra.mxu3 %v2904_v45  ;;  %1329 = vmatpush.msra.mxu1 %v2010_v61  ;;  %v2038_v61 = vld [vmem:[%s3413_s3 + $0x538] sm:$0xff] }
 0x281   : > { %1440 = vmatpush.msra.mxu0 %v2051_v62  ;;  %1175 = vmatpush.msrb.mxu2 %v1962_v63  ;;  %v2036_v62 = vld [vmem:[%s3413_s3 + $0x528] sm:$0xff]  ;;  %v2034_v63 = vld [vmem:[%s3413_s3 + $0x518] sm:$0xff] }
 0x282   : > { %1330 = vmatpush.msra.mxu1 %v2008_v1  ;;  %v914_v1 = vpop.f32.mrf.mxu3 }
 0x283   : > { %1441 = vmatpush.msra.mxu0 %v2049_v5  ;;  %1176 = vmatpush.msrb.mxu2 %v1960_v7 }
 0x284   : > { %1331 = vmatpush.msra.mxu1 %v2006_v8  ;;  %1941 = vmatmul.msk.f32.vlgmr.msra.gmra.mxu2 %vm732_vm4, %v2887_v39  ;;  %v3081_v39 = vrot.slane %v1375_v33, 5 }
 0x285   : > { %1442 = vmatpush.msra.mxu0 %v2047_v11  ;;  %1177 = vmatpush.msrb.mxu2 %v1958_v12 }
 0x286   : > { %2027 = vmatmul.msk.f32.vlgmr.msrb.gmra.mxu0 %vm732_vm4, %v2995_v13  ;;  %1332 = vmatpush.msra.mxu1 %v2004_v14  ;;  %v1387_v46 = vsel %vm775_vm3, %v1377_v4, %v3081_v39 }
 0x287   : > { %1443 = vmatpush.msra.mxu0 %v2045_v15  ;;  %1178 = vmatpush.msrb.mxu2 %v1956_v16 }
 0x288   : > { %1985 = vmatmul.msk.f32.vlgmr.msrb.gmra.mxu1 %vm732_vm4, %v2901_v44  ;;  %2071 = vmatmul.msk.f32.vlgmr.msra.gmra.mxu3 %vm732_vm4, %v3010_v17  ;;  %v2024_v44 = vld [vmem:[%s3413_s3 + $0x4e8] sm:$0xff] }
 0x289   : > { %1333 = vmatpush.msra.mxu1 %v2002_v18  ;;  %1444 = vmatpush.msra.mxu0 %v2043_v19 }
 0x28a   : > { %1179 = vmatpush.msrb.mxu2 %v1954_v20  ;;  %v917_v2 = vpop.f32.mrf.mxu3 }
 0x28b   : > { %1334 = vmatpush.msra.mxu1 %v2000_v21  ;;  %1445 = vmatpush.msra.mxu0 %v2041_v22 }
 0x28c   : > { %1180 = vmatpush.msrb.mxu2 %v1952_v23 }
 0x28d   : > { %1335 = vmatpush.msra.mxu1 %v1998_v24  ;;  %1446 = vmatpush.msra.mxu0 %v2039_v25 }
 0x28e   : > { %1942 = vmatmul.msk.f32.gmra.mxu2 %vm732_vm4, %v2869_v32  ;;  %2028 = vmatmul.msk.f32.gmra.mxu0 %vm732_vm4, %v2973_v3  ;;  %v1946_v32 = vld [vmem:[%s3413_s3 + $0x298] sm:$0xff] }
 0x28f   : > { %1181 = vmatpush.msrb.mxu2 %v1950_v26  ;;  %1336 = vmatpush.msra.mxu1 %v1996_v27 }
 0x290   : > { %1447 = vmatpush.msra.mxu0 %v2037_v28  ;;  %1986 = vmatmul.msk.f32.gmra.mxu1 %vm732_vm4, %v2878_v37  ;;  %v1990_v37 = vld [vmem:[%s3413_s3 + $0x3d8] sm:$0xff] }
 0x291   : > { %1182 = vmatpush.msrb.mxu2 %v1948_v29  ;;  %1337 = vmatpush.msra.mxu1 %v1994_v30 }
 0x292   : > { %1448 = vmatpush.msra.mxu0 %v2035_v31  ;;  %2072 = vmatmul.msk.f32.gmra.mxu3 %vm732_vm4, %v2985_v10 }
 0x293   : > { %1183 = vmatpush.msrb.mxu2 %v1946_v32  ;;  %1338 = vmatpush.msra.mxu1 %v1992_v34 }
 0x294   : > { %1449 = vmatpush.msra.mxu0 %v2033_v36 }
 0x295   : > { %1184 = vmatpush.msrb.mxu2 %v1944_v6  ;;  %1339 = vmatpush.msra.mxu1 %v1990_v37 }
 0x296   : > { %1450 = vmatpush.msra.mxu0 %v2031_v41  ;;  %1185 = vmatmul.f32.vlgmr.msrb.gmra.mxu2 %v2897_v43  ;;  %v2068_v43 = vld [vmem:[%s3413_s3 + $0x628] sm:$0xff] }
 0x297   : > { %1360 = vmatpush.msra.mxu2 %v2026_v40  ;;  %1451 = vmatmul.f32.vlgmr.msra.gmra.mxu0 %v1387_v46 }
 0x298   : > { %1340 = vmatpush.msra.mxu1 %v1988_v42 }
 0x299   : > { %1361 = vmatpush.msra.mxu2 %v2024_v44  ;;  %1341 = vmatmul.f32.vlgmr.msra.gmra.mxu1 %v2917_v48  ;;  %v2060_v48 = vld [vmem:[%s3413_s3 + $0x5e8] sm:$0xff] }
 0x29a   : > { %1516 = vmatpush.msrb.mxu1 %v2070_v47 }
 0x29b   : > { %1362 = vmatpush.msra.mxu2 %v2022_v38 }
 0x29c   : > { %1517 = vmatpush.msrb.mxu1 %v2068_v43 }
 0x29d   : > { %1363 = vmatpush.msra.mxu2 %v2020_v49 }
 0x29e   : > { %1518 = vmatpush.msrb.mxu1 %v2066_v51  ;;  %1188 = vmatmul.f32.gmra.mxu2 %v2874_v35  ;;  %v2052_v35 = vld [vmem:[%s3413_s3 + $0x5a8] sm:$0xff] }
 0x29f   : > { %1481 = vmatpush.msrb.mxu2 %v2062_v50  ;;  %1454 = vmatmul.f32.gmra.mxu0 %v3081_v39 }
 0x2a0   : > { %1519 = vmatpush.msrb.mxu1 %v2064_v52 }
 0x2a1   : > { %1482 = vmatpush.msrb.mxu2 %v2060_v48  ;;  %1344 = vmatmul.f32.gmra.mxu1 %v2904_v45  ;;  %v2050_v45 = vld [vmem:[%s3413_s3 + $0x598] sm:$0xff] }
 0x2a3   : > { %1483 = vmatpush.msrb.mxu2 %v2058_v53 }
 0x2a5   : > { %1484 = vmatpush.msrb.mxu2 %v2056_v54 }
 0x2a6   : > { %2029 = vmatmul.msk.f32.vlgmr.msra.gmra.mxu2 %vm732_vm4, %v2995_v13 }
 0x2a7   : > { %1485 = vmatpush.msrb.mxu2 %v2054_v55  ;;  %v1546_v55 = vld [vmem:[%s3414_s4] sm:$0x3] }
 0x2a9   : > { %1486 = vmatpush.msrb.mxu2 %v2052_v35  ;;  %2073 = vmatmul.msk.f32.vlgmr.msrb.gmra.mxu1 %vm732_vm4, %v3010_v17 }
 0x2ab   : > { %1487 = vmatpush.msrb.mxu2 %v2050_v45 }
 0x2ad   : > { %1488 = vmatpush.msrb.mxu2 %v2048_v56 }
 0x2ae   : > { %2030 = vmatmul.msk.f32.gmra.mxu2 %vm732_vm4, %v2973_v3  ;;  %v960_v3 = vpop.f32.mrf.mxu3 }
 0x2af   : > { %1489 = vmatpush.msrb.mxu2 %v2046_v57  ;;  %v1548_v57 = vperm.slane %v1546_v55, 0 }
 0x2b1   : > { %1490 = vmatpush.msrb.mxu2 %v2044_v58  ;;  %2074 = vmatmul.msk.f32.gmra.mxu1 %vm732_vm4, %v2985_v10 }
 0x2b3   : > { %1491 = vmatpush.msrb.mxu2 %v2042_v59 }
 0x2b5   : > { %1492 = vmatpush.msrb.mxu2 %v2040_v60 }
 0x2b6   : > { %v963_v5 = vpop.f32.mrf.mxu3 }
 0x2b7   : > { %1493 = vmatpush.msrb.mxu2 %v2038_v61 }
 0x2b9   : > { %1494 = vmatpush.msrb.mxu2 %v2036_v62 }
 0x2bb   : > { %1495 = vmatpush.msrb.mxu2 %v2034_v63 }
 0x2bd   : > { %1496 = vmatpush.msrb.mxu2 %v2032_v0 }
 0x2be   : > { %1497 = vmatmul.f32.vlgmr.msrb.gmra.mxu2 %v1387_v46 }
 0x2c6   : > { %1500 = vmatmul.f32.gmra.mxu2 %v3081_v39 }
 0x2e1   : > { %v937_v7 = vpop.f32.mrf.mxu0 }
 0x2e2   : > { %v961_v8 = vadd.f32 %v960_v3, %v937_v7 }
 0x2e3   : > { %v988_v14 = vpop.f32.mrf.mxu1 }
 0x2e7   : > { %v891_v9 = vpop.f32.mrf.mxu2 }
 0x2e8   : > { %v915_v30 = vadd.f32 %v914_v1, %v891_v9 }
 0x2e9   : > { %v940_v10 = vpop.f32.mrf.mxu0  ;;  %v1034_v11 = vpop.f32.mrf.mxu3 }
 0x2ea   : > { %v964_v12 = vadd.f32 %v963_v5, %v940_v10  ;;  %v1035_v13 = vadd.f32 %v1034_v11, %v961_v8  ;;  %v989_v34 = vadd.f32 %v988_v14, %v915_v30 }
 0x2eb   : > { %v991_v20 = vpop.f32.mrf.mxu1 }
 0x2ef   : > { %v894_v15 = vpop.f32.mrf.mxu2 }
 0x2f0   : > { %v918_v33 = vadd.f32 %v917_v2, %v894_v15 }
 0x2f1   : > { %v1037_v16 = vpop.f32.mrf.mxu3  ;;  %v1140_v17 = vpop.f32.mrf.mxu0 }
 0x2f2   : > { %v1038_v18 = vadd.f32 %v1037_v16, %v964_v12  ;;  %v992_v37 = vadd.f32 %v991_v20, %v918_v33  ;;  %v1586_v33 = vld [vmem:[%s3415_s5 + $0x48] sm:$0xff] }
 0x2f3   : > { %v1163_v24 = vpop.f32.mrf.mxu1 }
 0x2f4   : > { %v1164_v40 = vadd.f32 %v1163_v24, %v1140_v17 }
 0x2f7   : > { %v1011_v19 = vpop.f32.mrf.mxu2 }
 0x2f8   : > { %v1012_v6 = vadd.f32 %v1011_v19, %v989_v34  ;;  %v2100_v34 = vld [vmem:[%s3415_s5 + $0x118] sm:$0xff] }
 0x2f9   : > { %v1296_v22 = vpop.f32.mrf.mxu3  ;;  %1671 = vmatpush.msra.mxu1 %v2100_v34 }
 0x2fa   : > { %v1143_v21 = vpop.f32.mrf.mxu0  ;;  %v1215_v42 = vadd.f32 %v1164_v40, %v1012_v6  ;;  %v1585_v6 = vld [vmem:[%s3415_s5 + $0x40] sm:$0xff] }
 0x2fc   : > { %v1166_v29 = vpop.f32.mrf.mxu1 }
 0x2fd   : > { %v1167_v44 = vadd.f32 %v1166_v29, %v1143_v21 }
 0x2ff   : > { %v1014_v23 = vpop.f32.mrf.mxu2 }
 0x300   : > { %v1015_v41 = vadd.f32 %v1014_v23, %v992_v37  ;;  %v1584_v37 = vld [vmem:[%s3415_s5 + $0x38] sm:$0xff] }
 0x302   : > { %v1217_v43 = vadd.f32 %v1167_v44, %v1015_v41  ;;  %v1580_v44 = vld [vmem:[%s3415_s5 + $0x18] sm:$0xff] }
 0x303   : > { %v1319_v25 = vpop.f32.mrf.mxu0  ;;  %v1299_v27 = vpop.f32.mrf.mxu3 }
 0x304   : > { %v1320_v4 = vadd.f32 %v1319_v25, %v1296_v22 }
 0x305   : > { %v1209_v39 = vpop.f32.mrf.mxu1 }
 0x306   : > { %v1371_v50 = vadd.f32 %v1320_v4, %v1215_v42  ;;  %v1582_v4 = vld [vmem:[%s3415_s5 + $0x28] sm:$0xff]  ;;  %v1581_v42 = vld [vmem:[%s3415_s5 + $0x20] sm:$0xff] }
 0x307   : > { %v1057_v26 = vpop.f32.mrf.mxu2 }
 0x308   : > { %v1058_v8 = vadd.f32 %v1057_v26, %v1035_v13 }
 0x30b   : > { %v1322_v28 = vpop.f32.mrf.mxu0  ;;  %v1475_v31 = vpop.f32.mrf.mxu3 }
 0x30c   : > { %v1323_v46 = vadd.f32 %v1322_v28, %v1299_v27  ;;  %v1549_v28 = vperm.slane %v1546_v55, 1  ;;  %v2084_v55 = vld [vmem:[%s3415_s5 + $0xa0] sm:$0xff] }
 0x30d   : > { %v1212_v35 = vpop.f32.mrf.mxu1 }
 0x30e   : > { %v1373_v48 = vadd.f32 %v1323_v46, %v1217_v43  ;;  %v2099_v43 = vld [vmem:[%s3415_s5 + $0x110] sm:$0xff] }
 0x30f   : > { %1672 = vmatpush.msra.mxu1 %v2099_v43 }
 0x311   : > { %v1060_v32 = vpop.f32.mrf.mxu2 }
 0x312   : > { %v1061_v11 = vadd.f32 %v1060_v32, %v1038_v18  ;;  %v1588_v18 = vld [vmem:[%s3415_s5 + $0x58] sm:$0xff] }
 0x313   : > { %1597 = vmatpush.msrb.mxu3 %v1588_v18  ;;  %v2087_v32 = vld [vmem:[%s3415_s5 + $0xb8] sm:$0xff] }
 0x314   : > { %v1452_v36 = vpop.f32.mrf.mxu0  ;;  %1634 = vmatpush.msrb.mxu0 %v2087_v32 }
 0x315   : > { %v1476_v38 = vadd.f32 %v1475_v31, %v1452_v36  ;;  %v1478_v49 = vpop.f32.mrf.mxu3  ;;  %v1587_v31 = vld [vmem:[%s3415_s5 + $0x50] sm:$0xff]  ;;  %v2113_v36 = vld [vmem:[%s3415_s5 + $0x178] sm:$0xff] }
 0x316   : > { %v1342_v63 = vpop.f32.mrf.mxu1  ;;  %1598 = vmatpush.msrb.mxu3 %v1587_v31  ;;  %1708 = vmatpush.msra.mxu2 %v2113_v36 }
 0x317   : > { %v1527_v52 = vadd.f32 %v1476_v38, %v1371_v50  ;;  %v2112_v50 = vld [vmem:[%s3415_s5 + $0x170] sm:$0xff] }
 0x318   : > { %1599 = vmatpush.msrb.mxu3 %v1586_v33  ;;  %1709 = vmatpush.msra.mxu2 %v2112_v50 }
 0x319   : > { %v1186_v47 = vpop.f32.mrf.mxu2  ;;  %v1536_v45 = vrot.slane %v1527_v52, 5 }
 0x31a   : > { %v1210_v7 = vadd.f32 %v1209_v39, %v1186_v47  ;;  %1600 = vmatpush.msrb.mxu3 %v1585_v6  ;;  %v1583_v39 = vld [vmem:[%s3415_s5 + $0x30] sm:$0xff] }
 0x31b   : > { %v1579_v47 = vld [vmem:[%s3415_s5 + $0x10] sm:$0xff] }
 0x31c   : > { %v1455_v51 = vpop.f32.mrf.mxu0  ;;  %v1216_v12 = vadd.f32 %v1210_v7, %v1058_v8  ;;  %1601 = vmatpush.msrb.mxu3 %v1584_v37  ;;  %v2080_v7 = vld [vmem:[%s3415_s5 + $0x80] sm:$0xff] }
 0x31d   : > { %v1479_v53 = vadd.f32 %v1478_v49, %v1455_v51  ;;  %v2086_v49 = vld [vmem:[%s3415_s5 + $0xb0] sm:$0xff]  ;;  %v1578_v51 = vld [vmem:[%s3415_s5 + $0x8] sm:$0xff]  ;;  %v2093_v8 = vld [vmem:[%s3415_s5 + $0xe0] sm:$0xff] }
 0x31e   : > { %v1345_v1 = vpop.f32.mrf.mxu1  ;;  %1602 = vmatpush.msrb.mxu3 %v1583_v39  ;;  %1635 = vmatpush.msrb.mxu0 %v2086_v49  ;;  %v1576_v39 = vld [vmem:[%s3416_s6] sm:$0x1] }
 0x31f   : > { %v1529_v54 = vadd.f32 %v1479_v53, %v1373_v48  ;;  %v2085_v48 = vld [vmem:[%s3415_s5 + $0xa8] sm:$0xff] }
 0x320   : > { %1603 = vmatpush.msrb.mxu3 %v1582_v4  ;;  %v2111_v53 = vld [vmem:[%s3415_s5 + $0x168] sm:$0xff]  ;;  %1636 = vmatpush.msrb.mxu0 %v2085_v48 }
 0x321   : > { %v1537_v56 = vrot.slane %v1529_v54, 5  ;;  %v1189_v59 = vpop.f32.mrf.mxu2  ;;  %v1577_v54 = vld [vmem:[%s3415_s5] sm:$0xff]  ;;  %1710 = vmatpush.msra.mxu2 %v2111_v53 }
 0x322   : > { %v1213_v9 = vadd.f32 %v1212_v35, %v1189_v59  ;;  %1604 = vmatpush.msrb.mxu3 %v1581_v42  ;;  %v2097_v35 = vld [vmem:[%s3415_s5 + $0x100] sm:$0xff]  ;;  %1637 = vmatpush.msrb.mxu0 %v2084_v55  ;;  %v2109_v59 = vld [vmem:[%s3415_s5 + $0x158] sm:$0xff] }
 0x323   : > { %v1538_v58 = vsel %vm1535_vm10, %v1536_v45, %v1537_v56  ;;  %v2110_v45 = vld [vmem:[%s3415_s5 + $0x160] sm:$0xff]  ;;  %v2126_v56 = vld [vmem:[%s3415_s5 + $0x1d8] sm:$0xff] }
 0x324   : > { %v1544_v60 = vmax.f32 %v1527_v52, %v1538_v58  ;;  %v1218_v17 = vadd.f32 %v1213_v9, %v1061_v11  ;;  %1605 = vmatpush.msrb.mxu3 %v1580_v44  ;;  %v2098_v52 = vld [vmem:[%s3415_s5 + $0x108] sm:$0xff]  ;;  %v2096_v58 = vld [vmem:[%s3415_s5 + $0xf8] sm:$0xff]  ;;  %1711 = vmatpush.msra.mxu2 %v2110_v45  ;;  %v2106_v9 = vld [vmem:[%s3415_s5 + $0x140] sm:$0xff] }
 0x325   : > { %1673 = vmatpush.msra.mxu1 %v2098_v52  ;;  %v2079_v11 = vld [vmem:[%s3415_s5 + $0x78] sm:$0xff] }
 0x326   : > { %v1552_v61 = vadd.f32 %v1548_v57, %v1544_v60  ;;  %v1521_v3 = vpop.f32.mrf.mxu1  ;;  %1606 = vmatpush.msrb.mxu3 %v1579_v47  ;;  %v2083_v57 = vld [vmem:[%s3415_s5 + $0x98] sm:$0xff]  ;;  %v2125_v60 = vld [vmem:[%s3415_s5 + $0x1d0] sm:$0xff]  ;;  %1712 = vmatpush.msra.mxu2 %v2109_v59 }
 0x327   : > { %1674 = vmatpush.msra.mxu1 %v2097_v35  ;;  %1638 = vmatpush.msrb.mxu0 %v2083_v57 }
 0x328   : > { %v1554_v62 = vmax.f32 %v1552_v61, 0.0  ;;  %1607 = vmatpush.msrb.mxu3 %v1578_v51  ;;  %v2082_v61 = vld [vmem:[%s3415_s5 + $0x90] sm:$0xff] }
 0x329   : > { %v1365_v0 = vpop.f32.mrf.mxu2  ;;  %1675 = vmatpush.msra.mxu1 %v2096_v58  ;;  %1639 = vmatpush.msrb.mxu0 %v2082_v61 }
 0x32a   : > { %1557 = vrot.lane.b32.xlu1 %v1554_v62, %s2243_s20  ;;  %v1366_v10 = vadd.f32 %v1365_v0, %v1342_v63  ;;  %1608 = vmatpush.msrb.mxu3 %v1577_v54  ;;  %v2108_v63 = vld [vmem:[%s3415_s5 + $0x150] sm:$0xff]  ;;  %v2124_v0 = vld [vmem:[%s3415_s5 + $0x1c8] sm:$0xff] }
 0x32b   : > { %1713 = vmatpush.msra.mxu2 %v2108_v63 }
 0x32c   : > { %v1372_v19 = vadd.f32 %v1366_v10, %v1216_v12  ;;  %1745 = vmatpush.msra.mxu3 %v2126_v56  ;;  %v2122_v10 = vld [vmem:[%s3415_s5 + $0x1b8] sm:$0xff] }
 0x32d   : > { %v2092_v12 = vld [vmem:[%s3415_s5 + $0xd8] sm:$0xff] }
 0x32e   : > { %v1524_v16 = vpop.f32.mrf.mxu1  ;;  %1746 = vmatpush.msra.mxu3 %v2125_v60 }
 0x330   : > { %1747 = vmatpush.msra.mxu3 %v2124_v0 }
 0x331   : > { %v1368_v2 = vpop.f32.mrf.mxu2 }
 0x332   : > { %v1369_v14 = vadd.f32 %v1368_v2, %v1345_v1  ;;  %v2081_v1 = vld [vmem:[%s3415_s5 + $0x88] sm:$0xff] }
 0x333   : > { %v2094_v2 = vld [vmem:[%s3415_s5 + $0xe8] sm:$0xff]  ;;  %1640 = vmatpush.msrb.mxu0 %v2081_v1 }
 0x334   : > { %v1374_v21 = vadd.f32 %v1369_v14, %v1218_v17  ;;  %v2105_v14 = vld [vmem:[%s3415_s5 + $0x138] sm:$0xff]  ;;  %v2091_v17 = vld [vmem:[%s3415_s5 + $0xd0] sm:$0xff] }
 0x335   : > { %1641 = vmatpush.msrb.mxu0 %v2080_v7 }
 0x337   : > { %1642 = vmatpush.msrb.mxu0 %v2079_v11 }
 0x341   : > { %v1498_v5 = vpop.f32.mrf.mxu2 }
 0x342   : > { %v1522_v15 = vadd.f32 %v1521_v3, %v1498_v5  ;;  %v2107_v3 = vld [vmem:[%s3415_s5 + $0x148] sm:$0xff]  ;;  %v2123_v5 = vld [vmem:[%s3415_s5 + $0x1c0] sm:$0xff] }
 0x343   : > { %1714 = vmatpush.msra.mxu2 %v2107_v3  ;;  %1748 = vmatpush.msra.mxu3 %v2123_v5 }
 0x344   : > { %v1528_v22 = vadd.f32 %v1522_v15, %v1372_v19  ;;  %v2121_v15 = vld [vmem:[%s3415_s5 + $0x1b0] sm:$0xff] }
 0x345   : > { %1715 = vmatpush.msra.mxu2 %v2106_v9  ;;  %1749 = vmatpush.msra.mxu3 %v2122_v10  ;;  %v2104_v19 = vld [vmem:[%s3415_s5 + $0x130] sm:$0xff] }
 0x346   : > { %v1539_v25 = vrot.slane %v1528_v22, 5 }
 0x347   : > { %1716 = vmatpush.msra.mxu2 %v2105_v14  ;;  %1750 = vmatpush.msra.mxu3 %v2121_v15 }
 0x349   : > { %v1501_v20 = vpop.f32.mrf.mxu2  ;;  %1717 = vmatpush.msra.mxu2 %v2104_v19 }
 0x34a   : > { %v1525_v23 = vadd.f32 %v1524_v16, %v1501_v20  ;;  %v2078_v16 = vld [vmem:[%s3415_s5 + $0x70] sm:$0xff]  ;;  %v2120_v20 = vld [vmem:[%s3415_s5 + $0x1a8] sm:$0xff] }
 0x34b   : > { %1643 = vmatpush.msrb.mxu0 %v2078_v16  ;;  %1751 = vmatpush.msra.mxu3 %v2120_v20 }
 0x34c   : > { %v1530_v24 = vadd.f32 %v1525_v23, %v1374_v21  ;;  %v2077_v21 = vld [vmem:[%s3415_s5 + $0x68] sm:$0xff] }
 0x34d   : > { %v2103_v23 = vld [vmem:[%s3415_s5 + $0x128] sm:$0xff]  ;;  %1644 = vmatpush.msrb.mxu0 %v2077_v21 }
 0x34e   : > { %v1540_v27 = vrot.slane %v1530_v24, 5  ;;  %v2119_v24 = vld [vmem:[%s3415_s5 + $0x1a0] sm:$0xff]  ;;  %1718 = vmatpush.msra.mxu2 %v2103_v23 }
 0x34f   : > { %1752 = vmatpush.msra.mxu3 %v2119_v24 }
 0x350   : > { %v1541_v29 = vsel %vm1535_vm10, %v1539_v25, %v1540_v27  ;;  %v2076_v25 = vld [vmem:[%s3415_s5 + $0x60] sm:$0xff] }
 0x351   : > { %v1545_v13 = vmax.f32 %v1528_v22, %v1541_v29  ;;  %v2090_v22 = vld [vmem:[%s3415_s5 + $0xc8] sm:$0xff]  ;;  %v2089_v27 = vld [vmem:[%s3415_s5 + $0xc0] sm:$0xff]  ;;  %1645 = vmatpush.msrb.mxu0 %v2076_v25  ;;  %v2118_v29 = vld [vmem:[%s3415_s5 + $0x198] sm:$0xff] }
 0x352   : > { %1753 = vmatpush.msra.mxu3 %v2118_v29 }
 0x353   : > { %v1553_v26 = vadd.f32 %v1549_v28, %v1545_v13  ;;  %v2102_v28 = vld [vmem:[%s3415_s5 + $0x120] sm:$0xff]  ;;  %v2117_v13 = vld [vmem:[%s3415_s5 + $0x190] sm:$0xff] }
 0x354   : > { %1719 = vmatpush.msra.mxu2 %v2102_v28  ;;  %1754 = vmatpush.msra.mxu3 %v2117_v13 }
 0x355   : > { %v1555_v30 = vmax.f32 %v1553_v26, 0.0  ;;  %v2116_v26 = vld [vmem:[%s3415_s5 + $0x188] sm:$0xff] }
 0x356   : > { %1755 = vmatpush.msra.mxu3 %v2116_v26 }
 0x357   : > { %1562 = vrot.lane.b32.xlu2 %v1555_v30, %s2243_s20 }
 0x39c   : > { %v1558_v40 = vpop.permute.xlu1 %1557 }
 0x39d   : > { %v3214_v41 = vmax.f32 %v1554_v62, %v1558_v40  ;;  %v2095_v62 = vld [vmem:[%s3415_s5 + $0xf0] sm:$0xff] }
 0x39e   : > { %1676 = vmatpush.msra.mxu1 %v2095_v62 }
 0x39f   : > { %1567 = vrot.lane.b32.xlu0 %v3214_v41, %s2243_s20 }
 0x3a0   : > { %1677 = vmatpush.msra.mxu1 %v2094_v2 }
 0x3a2   : > { %1678 = vmatpush.msra.mxu1 %v2093_v8 }
 0x3a4   : > { %1679 = vmatpush.msra.mxu1 %v2092_v12 }
 0x3a6   : > { %1680 = vmatpush.msra.mxu1 %v2091_v17 }
 0x3a8   : > { %1681 = vmatpush.msra.mxu1 %v2090_v22 }
 0x3aa   : > { %1682 = vmatpush.msra.mxu1 %v2089_v27 }
 0x3b1   : > { %v1563_v46 = vpop.permute.xlu2 %1562 }
 0x3b2   : > { %v1565_v38 = vmax.f32 %v1555_v30, %v1563_v46  ;;  %v2115_v30 = vld [vmem:[%s3415_s5 + $0x180] sm:$0xff] }
 0x3b3   : > { %1756 = vmatpush.msra.mxu3 %v2115_v30 }
 0x3b4   : > { %1571 = vrot.lane.b32.xlu1 %v1565_v38, %s2244_s21  ;;  %s2193_s21 = scalar_lea.hbm %s2192_s8, 1 }
 0x3b5   : > { %p2194_p11 = scmp.ne.s32.totalorder %s2192_s8, %s2193_s21  ;;  %p2199_p1 = scmp.lt.s32.totalorder %s2197_s13, %s2193_s21 }
 0x3b7   : > { %p2195_p12 = pnand %p2194_p11, %p2326_p5  ;;  %p2200_p2 = por %p2199_p1, %p2198_p0 }
 0x3b9   : > { %p2196_p13 = pneg %p2195_p12 }
 0x3bb   : > { %p2201_p3 = pnand %p2200_p2, %p2196_p13 }
 0x411   : > { %v1568_v18 = vpop.permute.xlu0 %1567 }
 0x412   : > { %v1574_v31 = vsel %vm732_vm4, %v3214_v41, %v1568_v18 }
 0x426   : > { %v1572_v33 = vpop.permute.xlu1 %1571 }
 0x427   : > { %v1575_v32 = vsel %vm738_vm6, %v1574_v31, %v1572_v33 }
 0x428   : > { %v1627_v34 = vrot.slane %v1575_v32, 1  ;;  %v1664_v36 = vrot.slane %v1575_v32, 2  ;;  %v1701_v6 = vrot.slane %v1575_v32, 3  ;;  %2075 = vmatmul.msk.f32.vlgmr.msrb.gmra.mxu3 %vm1589_vm11, %v1575_v32  ;;  %v1738_v37 = vrot.slane %v1575_v32, 4 }
 0x42a   : > { %2088 = vmatmul.msk.f32.vlgmr.msrb.gmra.mxu0 %vm1589_vm11, %v1627_v34  ;;  %2101 = vmatmul.msk.f32.vlgmr.msra.gmra.mxu1 %vm1589_vm11, %v1664_v36 }
 0x42b   : > { %2114 = vmatmul.msk.f32.vlgmr.msra.gmra.mxu2 %vm1589_vm11, %v1701_v6 }
 0x430   : > { %2127 = vmatmul.msk.f32.vlgmr.msra.gmra.mxu3 %vm1589_vm11, %v1738_v37 }
 0x4a7   : > { %v1647_v4 = vpop.f32.mrf.mxu0  ;;  %v1684_v44 = vpop.f32.mrf.mxu1 }
 0x4ab   : > { %v1610_v40 = vpop.f32.mrf.mxu3 }
 0x4ac   : > { %v1613_v41 = vadd.f32 %v1610_v40, %v1576_v39 }
 0x4ae   : > { %v1650_v42 = vadd.f32 %v1647_v4, %v1613_v41  ;;  %v1721_v38 = vpop.f32.mrf.mxu2 }
 0x4b0   : > { %v1687_v46 = vadd.f32 %v1684_v44, %v1650_v42 }
 0x4b2   : > { %v1724_v47 = vadd.f32 %v1721_v38, %v1687_v46 }
 0x4b3   : > { %v1758_v49 = vpop.f32.mrf.mxu3 }
 0x4b4   : > { %v1761_v43 = vadd.f32 %v1758_v49, %v1724_v47 }
 0x4b6   : > { %1763 = vst.msk [vmem:[%s270_s19] sm:$0x1] %vm1762_vm12, %v1761_v43 }
 0x4b7   : > { %2204 = shalt.err (!%p2201_p3)
}
 0x4b8   : > { %2131 = dma.vmem_to_hbm [thread:$0]  (%p2326_p5), %s1776_s22, 16, %s1778_s23, %s1765_s29  }
 0x4b9 PF: > { %p2137_p4 = scmp.ge.s32.totalorder %s2239_s27, 2  ;;  %s1789_s17 = sand.u32 1, %s2227_s24  }
 0x4ba   : > { %s1790_s18 = scalar_lea.sflag [#allocation5], %s1789_s17 }
 0x4bb   : > { %p2134_p7 = pnand %p2137_p4, %p2330_p6 }
 0x4bd   : > { %p2135_p8 = pneg %p2134_p7 }
 0x4bf   : > { %2222 = dma.done.wait (%p2135_p8), %s1790_s18, 16  }
 0x4c0   : > { %2224 = vsyncadd (%p2135_p8), %s1790_s18, 4294967280  ;;  %p17_p9 = scmp.ge.s32.totalorder %s2313_s30, 4   ;;  %s3420_s24 = smov %s2231_s25 }
 0x4c1   : > { %s3421_s25 = smov %s2235_s26  ;;  %s3422_s26 = smov %s2324_s10 }
 0x4c2   : > { %s3423_s27 = smov %s2313_s30  ;;  %19 = sbr.rel (!%p17_p9) target bundleno = 3 (0x3), region = 99 }
 0x4c7   :  { %1795 = vsyncpa [#allocation5], 1 }
 0x4c8   :  { %1797 = vsyncpa [#allocation5 + $0x1], 1 }

</bundles_post_ra>
